<compile_context>
chip_gen: v5e
topology: v5e:2x2
jax: 0.10.0
libtpu: 0.0.40
codegen_flags: <defaults>
</compile_context>

<pallas_src>
import jax
import jax.numpy as jnp
from jax.experimental import pallas as pl
from jax.experimental.pallas import tpu as pltpu


def _subpixel_conv_kernel(xm_ref, xh_ref, w_ref, b_ref, o_ref, xt_ref):
    # xm_ref: (1, TH, Wp, C)  bf16  main rows of the padded input window
    # xh_ref: (1, 2,  Wp, C)  bf16  2-row bottom halo
    # w_ref : (4, 4, C, C)    bf16  [phase=2*ry+rx, tap=2*ta+tb, Cin, Cout]
    # b_ref : (1, C)          f32
    # o_ref : (4, 1, TH, W, C) bf16 phase-separated output planes
    # xt_ref: (TH+2, Wp, C)   bf16  VMEM scratch: assembled halo window
    TH = xm_ref.shape[1]
    Wp = xm_ref.shape[2]
    C = xm_ref.shape[3]
    W = Wp - 2

    # Assemble the (TH+2)-row window once in VMEM scratch.
    xt_ref[0:TH] = xm_ref[0]
    xt_ref[TH:TH + 2] = xh_ref[0]

    # Three column-shifted slabs, built once and reused by all 16 taps
    # (avoids re-slicing the sublane axis inside the tap loops).
    cols = [xt_ref[:, s:s + W, :] for s in range(3)]      # each (TH+2, W, C)

    bias = b_ref[...]                                      # (1, C) f32

    for ry in (0, 1):
        for rx in (0, 1):
            p = 2 * ry + rx
            acc = jnp.zeros((TH * W, C), jnp.float32)
            for ta in (0, 1):          # sub-pixel row tap
                for tb in (0, 1):      # sub-pixel col tap
                    slab = cols[rx + tb][ry + ta: ry + ta + TH]   # (TH, W, C)
                    acc = acc + jnp.dot(
                        slab.reshape(TH * W, C),
                        w_ref[p, 2 * ta + tb],
                        preferred_element_type=jnp.float32)
            o_ref[p, 0] = (acc + bias).astype(o_ref.dtype).reshape(TH, W, C)


def _make_phase_weights(w_oihw):
    """Fold the nearest-2x upsample into the conv weights.

    Returns (4, 4, Cin, Cout) bf16: [phase = 2*ry+rx, tap = 2*ta+tb].
    For output parity r, original kernel index d in {0,1,2} collapses onto
    sub-pixel tap 0 or 1 according to which source row/col it reads.
    """
    w = w_oihw.astype(jnp.float32)                    # (Cout, Cin, 3, 3)
    groups = {0: ([0], [1, 2]), 1: ([0, 1], [2])}     # parity -> (tap0 ds, tap1 ds)
    phases = []
    for ry in (0, 1):
        for rx in (0, 1):
            taps = []
            for dys in groups[ry]:
                for dxs in groups[rx]:
                    acc = sum(w[:, :, dy, dx] for dy in dys for dx in dxs)
                    taps.append(acc.T)                # (Cin, Cout)
            phases.append(jnp.stack(taps, axis=0))    # (4, Cin, Cout)
    return jnp.stack(phases, axis=0).astype(jnp.bfloat16)


def _pick_row_tile(H, W, C):
    """Largest even row tile dividing H whose halo window stays ~<= 2 MiB."""
    budget = 2 << 20
    cands = [th for th in range(2, H + 1, 2) if H % th == 0]
    pref = [th for th in cands if th <= max(2, H // 2)] or cands
    fit = [th for th in pref if (th + 2) * (W + 2) * C * 2 <= budget]
    return max(fit) if fit else min(pref)


def upsample_block(x_nchw, w_oihw, b, *, row_tile=None):
    """Forward pass of UpSampleBlock. x_nchw: (N, C, H, W) any float dtype."""
    N, C, H, W = x_nchw.shape

    # Nearest-neighbor replication commutes with the f32->bf16 cast, so cast
    # first: all subsequent data movement is bf16 at ORIGINAL resolution.
    x = x_nchw.astype(jnp.float32).astype(jnp.bfloat16)

    # Odd heights: appending one zero row does not change the first 2*H
    # output rows; it just makes the even-row-tile halo arithmetic valid.
    pad_h = H % 2
    if pad_h:
        x = jnp.pad(x, ((0, 0), (0, 0), (0, 1), (0, 0)))
    Hc = H + pad_h

    # NCHW -> NHWC (channels on lanes) + 1-pixel zero border.
    x = jnp.transpose(x, (0, 2, 3, 1))
    xp = jnp.pad(x, ((0, 0), (1, 1), (1, 1), (0, 0)))     # (N, Hc+2, W+2, C)

    TH = row_tile if row_tile is not None else _pick_row_tile(Hc, W, C)
    assert Hc % TH == 0 and TH % 2 == 0, (Hc, TH)
    T = Hc // TH
    Wp = W + 2

    w_eff = _make_phase_weights(w_oihw)                   # (4, 4, C, C) bf16
    b2 = b.reshape(1, C).astype(jnp.float32)

    out5 = pl.pallas_call(
        _subpixel_conv_kernel,
        out_shape=jax.ShapeDtypeStruct((4, N, Hc, W, C), jnp.bfloat16),
        grid_spec=pltpu.PrefetchScalarGridSpec(
            num_scalar_prefetch=0,
            grid=(N, T),
            in_specs=[
                # main TH rows of the padded input window
                pl.BlockSpec((1, TH, Wp, C), lambda n, t: (n, t, 0, 0)),
                # 2-row bottom halo (TH even => exact Blocked index)
                pl.BlockSpec((1, 2, Wp, C),
                             lambda n, t: (n, (t + 1) * (TH // 2), 0, 0)),
                # pre-summed sub-pixel weights (resident across the grid)
                pl.BlockSpec((4, 4, C, C), lambda n, t: (0, 0, 0, 0)),
                pl.BlockSpec((1, C), lambda n, t: (0, 0)),
            ],
            out_specs=pl.BlockSpec((4, 1, TH, W, C),
                                   lambda n, t: (0, n, t, 0, 0)),
            scratch_shapes=[pltpu.VMEM((TH + 2, Wp, C), jnp.bfloat16)],
        ),
        compiler_params=pltpu.CompilerParams(
            dimension_semantics=("parallel", "parallel"),
            vmem_limit_bytes=64 * 1024 * 1024,
        ),
    )(xp, xp, w_eff, b2)

    # Pixel-shuffle the 4 phase planes and convert NHWC -> NCHW in a single
    # relayout pass (an output transpose was required anyway).
    out6 = out5.reshape(2, 2, N, Hc, W, C)                 # [ry, rx, n, i, j, c]
    y = jnp.transpose(out6, (2, 5, 3, 0, 4, 1)).reshape(N, C, 2 * Hc, 2 * W)
    if pad_h:
        y = y[:, :, :2 * H, :]
    return y


def _reference(x_nchw, w_oihw, b):
    """Pure-JAX reference mirroring the PyTorch forward."""
    x = x_nchw.astype(jnp.float32)
    x = jnp.repeat(jnp.repeat(x, 2, axis=2), 2, axis=3)   # nearest 2x (NCHW)
    x = x.astype(jnp.bfloat16)
    y = jax.lax.conv_general_dilated(
        x.astype(jnp.float32), w_oihw.astype(jnp.float32),
        window_strides=(1, 1), padding=((1, 1), (1, 1)),
        dimension_numbers=('NCHW', 'OIHW', 'NCHW'))
    y = y + b.astype(jnp.float32).reshape(1, -1, 1, 1)
    return y.astype(jnp.bfloat16)


if __name__ == "__main__":
    key = jax.random.PRNGKey(0)
    k1, k2, k3 = jax.random.split(key, 3)

    N, C, H, W = 2, 4, 16, 16
    x = jax.random.normal(k1, (N, C, H, W), jnp.float32)

    # Deterministic Conv2d(C, C, 3, 1, 1) parameter init (PyTorch-like bound).
    fan_in = C * 3 * 3
    bound = 1.0 / (fan_in ** 0.5)
    w = jax.random.uniform(k2, (C, C, 3, 3), jnp.float32, minval=-bound, maxval=bound)
    b = jax.random.uniform(k3, (C,), jnp.float32, minval=-bound, maxval=bound)

    fwd = jax.jit(upsample_block)
    y = jax.block_until_ready(fwd(x, w, b))
    assert y.shape == (N, C, 2 * H, 2 * W), y.shape
    assert y.dtype == jnp.bfloat16, y.dtype

    y_ref = _reference(x, w, b)
    assert jnp.allclose(y.astype(jnp.float32), y_ref.astype(jnp.float32),
                        atol=2e-2, rtol=2e-2), "mismatch vs reference"

    print("KERNEL_OK")
</pallas_src>

<mosaic_0001>
module attributes {stable_mosaic.version = 11 : i64} {
  func.func @_subpixel_conv_kernel(%arg0: i32, %arg1: i32, %arg2: memref<1x8x18x4xbf16, #tpu.memory_space<vmem>>, %arg3: memref<1x2x18x4xbf16, #tpu.memory_space<vmem>>, %arg4: memref<4x4x4x4xbf16, #tpu.memory_space<vmem>>, %arg5: memref<1x4xf32, #tpu.memory_space<vmem>>, %arg6: memref<4x1x8x16x4xbf16, #tpu.memory_space<vmem>>, %arg7: memref<10x18x4xbf16, #tpu.memory_space<vmem>>) attributes {dimension_semantics = [#tpu.dimension_semantics<parallel>, #tpu.dimension_semantics<parallel>], iteration_bounds = array<i64: 2, 2>, scalar_prefetch = 0 : i64, scratch_operands = 1 : i64, tpu.core_type = #tpu.core_type<tc>, window_params = [{transform_indices = @transform_0, window_bounds = array<i64: 1, 8, 18, 4>}, {transform_indices = @transform_1, window_bounds = array<i64: 1, 2, 18, 4>}, {pipeline_mode = #tpu.pipeline_mode<synchronous>, transform_indices = @transform_2, window_bounds = array<i64: 4, 4, 4, 4>}, {pipeline_mode = #tpu.pipeline_mode<synchronous>, transform_indices = @transform_3, window_bounds = array<i64: 1, 4>}, {transform_indices = @transform_4, window_bounds = array<i64: 4, 1, 8, 16, 4>}]} {
    %c0 = arith.constant 0 : index
    %c0_0 = arith.constant 0 : index
    %c0_1 = arith.constant 0 : index
    %c0_2 = arith.constant 0 : index
    %0 = vector.load %arg2[%c0, %c0_0, %c0_1, %c0_2] : memref<1x8x18x4xbf16, #tpu.memory_space<vmem>>, vector<1x8x18x4xbf16>
    %1 = vector.shape_cast %0 : vector<1x8x18x4xbf16> to vector<8x18x4xbf16>
    %c0_3 = arith.constant 0 : index
    %c0_4 = arith.constant 0 : index
    %c0_5 = arith.constant 0 : index
    %2 = vector.load %arg7[%c0_3, %c0_4, %c0_5] : memref<10x18x4xbf16, #tpu.memory_space<vmem>>, vector<8x18x4xbf16>
    tpu.vector_store %arg7[%c0_3, %c0_4, %c0_5], %1 {strides = array<i32>} : memref<10x18x4xbf16, #tpu.memory_space<vmem>>, vector<8x18x4xbf16>,
    %c0_6 = arith.constant 0 : index
    %c0_7 = arith.constant 0 : index
    %c0_8 = arith.constant 0 : index
    %c0_9 = arith.constant 0 : index
    %3 = vector.load %arg3[%c0_6, %c0_7, %c0_8, %c0_9] : memref<1x2x18x4xbf16, #tpu.memory_space<vmem>>, vector<1x2x18x4xbf16>
    %4 = vector.shape_cast %3 : vector<1x2x18x4xbf16> to vector<2x18x4xbf16>
    %c8 = arith.constant 8 : index
    %c0_10 = arith.constant 0 : index
    %c0_11 = arith.constant 0 : index
    %5 = vector.load %arg7[%c8, %c0_10, %c0_11] : memref<10x18x4xbf16, #tpu.memory_space<vmem>>, vector<2x18x4xbf16>
    tpu.vector_store %arg7[%c8, %c0_10, %c0_11], %4 {strides = array<i32>} : memref<10x18x4xbf16, #tpu.memory_space<vmem>>, vector<2x18x4xbf16>,
    %c0_12 = arith.constant 0 : index
    %c0_13 = arith.constant 0 : index
    %c0_14 = arith.constant 0 : index
    %6 = vector.load %arg7[%c0_12, %c0_13, %c0_14] : memref<10x18x4xbf16, #tpu.memory_space<vmem>>, vector<10x16x4xbf16>
    %c0_15 = arith.constant 0 : index
    %c1 = arith.constant 1 : index
    %c0_16 = arith.constant 0 : index
    %7 = vector.load %arg7[%c0_15, %c1, %c0_16] : memref<10x18x4xbf16, #tpu.memory_space<vmem>>, vector<10x16x4xbf16>
    %c0_17 = arith.constant 0 : index
    %c2 = arith.constant 2 : index
    %c0_18 = arith.constant 0 : index
    %8 = vector.load %arg7[%c0_17, %c2, %c0_18] : memref<10x18x4xbf16, #tpu.memory_space<vmem>>, vector<10x16x4xbf16>
    %c0_19 = arith.constant 0 : index
    %c0_20 = arith.constant 0 : index
    %9 = vector.load %arg5[%c0_19, %c0_20] : memref<1x4xf32, #tpu.memory_space<vmem>>, vector<1x4xf32>
    %cst = arith.constant 0.000000e+00 : f32
    %10 = vector.broadcast %cst : f32 to vector<128x4xf32>
    %11 = vector.extract_strided_slice %6 {offsets = [0, 0, 0], sizes = [8, 16, 4], strides = [1, 1, 1]} : vector<10x16x4xbf16> to vector<8x16x4xbf16>
    %12 = vector.shape_cast %11 : vector<8x16x4xbf16> to vector<128x4xbf16>
    %c0_21 = arith.constant 0 : index
    %c0_22 = arith.constant 0 : index
    %c0_23 = arith.constant 0 : index
    %c0_24 = arith.constant 0 : index
    %13 = vector.load %arg4[%c0_21, %c0_22, %c0_23, %c0_24] : memref<4x4x4x4xbf16, #tpu.memory_space<vmem>>, vector<1x1x4x4xbf16>
    %14 = vector.shape_cast %13 : vector<1x1x4x4xbf16> to vector<4x4xbf16>
    %cst_25 = arith.constant dense<0.000000e+00> : vector<128x4xf32>
    %15 = tpu.matmul %12, %14, %cst_25 {dimension_numbers = #tpu.dot_dimension_numbers<[1], [0], [0], [1], [0, 0, 1, 1], [], []>} : vector<128x4xbf16>, vector<4x4xbf16>, vector<128x4xf32> -> vector<128x4xf32>
    %16 = arith.addf %10, %15 : vector<128x4xf32>
    %17 = vector.extract_strided_slice %7 {offsets = [0, 0, 0], sizes = [8, 16, 4], strides = [1, 1, 1]} : vector<10x16x4xbf16> to vector<8x16x4xbf16>
    %18 = vector.shape_cast %17 : vector<8x16x4xbf16> to vector<128x4xbf16>
    %c0_26 = arith.constant 0 : index
    %c1_27 = arith.constant 1 : index
    %c0_28 = arith.constant 0 : index
    %c0_29 = arith.constant 0 : index
    %19 = vector.load %arg4[%c0_26, %c1_27, %c0_28, %c0_29] : memref<4x4x4x4xbf16, #tpu.memory_space<vmem>>, vector<1x1x4x4xbf16>
    %20 = vector.shape_cast %19 : vector<1x1x4x4xbf16> to vector<4x4xbf16>
    %cst_30 = arith.constant dense<0.000000e+00> : vector<128x4xf32>
    %21 = tpu.matmul %18, %20, %cst_30 {dimension_numbers = #tpu.dot_dimension_numbers<[1], [0], [0], [1], [0, 0, 1, 1], [], []>} : vector<128x4xbf16>, vector<4x4xbf16>, vector<128x4xf32> -> vector<128x4xf32>
    %22 = arith.addf %16, %21 : vector<128x4xf32>
    %23 = vector.extract_strided_slice %6 {offsets = [1, 0, 0], sizes = [8, 16, 4], strides = [1, 1, 1]} : vector<10x16x4xbf16> to vector<8x16x4xbf16>
    %24 = vector.shape_cast %23 : vector<8x16x4xbf16> to vector<128x4xbf16>
    %c0_31 = arith.constant 0 : index
    %c2_32 = arith.constant 2 : index
    %c0_33 = arith.constant 0 : index
    %c0_34 = arith.constant 0 : index
    %25 = vector.load %arg4[%c0_31, %c2_32, %c0_33, %c0_34] : memref<4x4x4x4xbf16, #tpu.memory_space<vmem>>, vector<1x1x4x4xbf16>
    %26 = vector.shape_cast %25 : vector<1x1x4x4xbf16> to vector<4x4xbf16>
    %cst_35 = arith.constant dense<0.000000e+00> : vector<128x4xf32>
    %27 = tpu.matmul %24, %26, %cst_35 {dimension_numbers = #tpu.dot_dimension_numbers<[1], [0], [0], [1], [0, 0, 1, 1], [], []>} : vector<128x4xbf16>, vector<4x4xbf16>, vector<128x4xf32> -> vector<128x4xf32>
    %28 = arith.addf %22, %27 : vector<128x4xf32>
    %29 = vector.extract_strided_slice %7 {offsets = [1, 0, 0], sizes = [8, 16, 4], strides = [1, 1, 1]} : vector<10x16x4xbf16> to vector<8x16x4xbf16>
    %30 = vector.shape_cast %29 : vector<8x16x4xbf16> to vector<128x4xbf16>
    %c0_36 = arith.constant 0 : index
    %c3 = arith.constant 3 : index
    %c0_37 = arith.constant 0 : index
    %c0_38 = arith.constant 0 : index
    %31 = vector.load %arg4[%c0_36, %c3, %c0_37, %c0_38] : memref<4x4x4x4xbf16, #tpu.memory_space<vmem>>, vector<1x1x4x4xbf16>
    %32 = vector.shape_cast %31 : vector<1x1x4x4xbf16> to vector<4x4xbf16>
    %cst_39 = arith.constant dense<0.000000e+00> : vector<128x4xf32>
    %33 = tpu.matmul %30, %32, %cst_39 {dimension_numbers = #tpu.dot_dimension_numbers<[1], [0], [0], [1], [0, 0, 1, 1], [], []>} : vector<128x4xbf16>, vector<4x4xbf16>, vector<128x4xf32> -> vector<128x4xf32>
    %34 = arith.addf %28, %33 : vector<128x4xf32>
    %35 = vector.broadcast %9 : vector<1x4xf32> to vector<128x4xf32>
    %36 = arith.addf %34, %35 : vector<128x4xf32>
    %37 = arith.truncf %36 : vector<128x4xf32> to vector<128x4xbf16>
    %38 = vector.shape_cast %37 : vector<128x4xbf16> to vector<8x16x4xbf16>
    %c0_40 = arith.constant 0 : index
    %c0_41 = arith.constant 0 : index
    %c0_42 = arith.constant 0 : index
    %c0_43 = arith.constant 0 : index
    %c0_44 = arith.constant 0 : index
    %39 = vector.load %arg6[%c0_40, %c0_41, %c0_42, %c0_43, %c0_44] : memref<4x1x8x16x4xbf16, #tpu.memory_space<vmem>>, vector<1x1x8x16x4xbf16>
    %40 = vector.shape_cast %39 : vector<1x1x8x16x4xbf16> to vector<8x16x4xbf16>
    %41 = vector.shape_cast %38 : vector<8x16x4xbf16> to vector<1x1x8x16x4xbf16>
    tpu.vector_store %arg6[%c0_40, %c0_41, %c0_42, %c0_43, %c0_44], %41 {strides = array<i32>} : memref<4x1x8x16x4xbf16, #tpu.memory_space<vmem>>, vector<1x1x8x16x4xbf16>,
    %cst_45 = arith.constant 0.000000e+00 : f32
    %42 = vector.broadcast %cst_45 : f32 to vector<128x4xf32>
    %43 = vector.extract_strided_slice %7 {offsets = [0, 0, 0], sizes = [8, 16, 4], strides = [1, 1, 1]} : vector<10x16x4xbf16> to vector<8x16x4xbf16>
    %44 = vector.shape_cast %43 : vector<8x16x4xbf16> to vector<128x4xbf16>
    %c1_46 = arith.constant 1 : index
    %c0_47 = arith.constant 0 : index
    %c0_48 = arith.constant 0 : index
    %c0_49 = arith.constant 0 : index
    %45 = vector.load %arg4[%c1_46, %c0_47, %c0_48, %c0_49] : memref<4x4x4x4xbf16, #tpu.memory_space<vmem>>, vector<1x1x4x4xbf16>
    %46 = vector.shape_cast %45 : vector<1x1x4x4xbf16> to vector<4x4xbf16>
    %cst_50 = arith.constant dense<0.000000e+00> : vector<128x4xf32>
    %47 = tpu.matmul %44, %46, %cst_50 {dimension_numbers = #tpu.dot_dimension_numbers<[1], [0], [0], [1], [0, 0, 1, 1], [], []>} : vector<128x4xbf16>, vector<4x4xbf16>, vector<128x4xf32> -> vector<128x4xf32>
    %48 = arith.addf %42, %47 : vector<128x4xf32>
    %49 = vector.extract_strided_slice %8 {offsets = [0, 0, 0], sizes = [8, 16, 4], strides = [1, 1, 1]} : vector<10x16x4xbf16> to vector<8x16x4xbf16>
    %50 = vector.shape_cast %49 : vector<8x16x4xbf16> to vector<128x4xbf16>
    %c1_51 = arith.constant 1 : index
    %c1_52 = arith.constant 1 : index
    %c0_53 = arith.constant 0 : index
    %c0_54 = arith.constant 0 : index
    %51 = vector.load %arg4[%c1_51, %c1_52, %c0_53, %c0_54] : memref<4x4x4x4xbf16, #tpu.memory_space<vmem>>, vector<1x1x4x4xbf16>
    %52 = vector.shape_cast %51 : vector<1x1x4x4xbf16> to vector<4x4xbf16>
    %cst_55 = arith.constant dense<0.000000e+00> : vector<128x4xf32>
    %53 = tpu.matmul %50, %52, %cst_55 {dimension_numbers = #tpu.dot_dimension_numbers<[1], [0], [0], [1], [0, 0, 1, 1], [], []>} : vector<128x4xbf16>, vector<4x4xbf16>, vector<128x4xf32> -> vector<128x4xf32>
    %54 = arith.addf %48, %53 : vector<128x4xf32>
    %55 = vector.extract_strided_slice %7 {offsets = [1, 0, 0], sizes = [8, 16, 4], strides = [1, 1, 1]} : vector<10x16x4xbf16> to vector<8x16x4xbf16>
    %56 = vector.shape_cast %55 : vector<8x16x4xbf16> to vector<128x4xbf16>
    %c1_56 = arith.constant 1 : index
    %c2_57 = arith.constant 2 : index
    %c0_58 = arith.constant 0 : index
    %c0_59 = arith.constant 0 : index
    %57 = vector.load %arg4[%c1_56, %c2_57, %c0_58, %c0_59] : memref<4x4x4x4xbf16, #tpu.memory_space<vmem>>, vector<1x1x4x4xbf16>
    %58 = vector.shape_cast %57 : vector<1x1x4x4xbf16> to vector<4x4xbf16>
    %cst_60 = arith.constant dense<0.000000e+00> : vector<128x4xf32>
    %59 = tpu.matmul %56, %58, %cst_60 {dimension_numbers = #tpu.dot_dimension_numbers<[1], [0], [0], [1], [0, 0, 1, 1], [], []>} : vector<128x4xbf16>, vector<4x4xbf16>, vector<128x4xf32> -> vector<128x4xf32>
    %60 = arith.addf %54, %59 : vector<128x4xf32>
    %61 = vector.extract_strided_slice %8 {offsets = [1, 0, 0], sizes = [8, 16, 4], strides = [1, 1, 1]} : vector<10x16x4xbf16> to vector<8x16x4xbf16>
    %62 = vector.shape_cast %61 : vector<8x16x4xbf16> to vector<128x4xbf16>
    %c1_61 = arith.constant 1 : index
    %c3_62 = arith.constant 3 : index
    %c0_63 = arith.constant 0 : index
    %c0_64 = arith.constant 0 : index
    %63 = vector.load %arg4[%c1_61, %c3_62, %c0_63, %c0_64] : memref<4x4x4x4xbf16, #tpu.memory_space<vmem>>, vector<1x1x4x4xbf16>
    %64 = vector.shape_cast %63 : vector<1x1x4x4xbf16> to vector<4x4xbf16>
    %cst_65 = arith.constant dense<0.000000e+00> : vector<128x4xf32>
    %65 = tpu.matmul %62, %64, %cst_65 {dimension_numbers = #tpu.dot_dimension_numbers<[1], [0], [0], [1], [0, 0, 1, 1], [], []>} : vector<128x4xbf16>, vector<4x4xbf16>, vector<128x4xf32> -> vector<128x4xf32>
    %66 = arith.addf %60, %65 : vector<128x4xf32>
    %67 = vector.broadcast %9 : vector<1x4xf32> to vector<128x4xf32>
    %68 = arith.addf %66, %67 : vector<128x4xf32>
    %69 = arith.truncf %68 : vector<128x4xf32> to vector<128x4xbf16>
    %70 = vector.shape_cast %69 : vector<128x4xbf16> to vector<8x16x4xbf16>
    %c1_66 = arith.constant 1 : index
    %c0_67 = arith.constant 0 : index
    %c0_68 = arith.constant 0 : index
    %c0_69 = arith.constant 0 : index
    %c0_70 = arith.constant 0 : index
    %71 = vector.load %arg6[%c1_66, %c0_67, %c0_68, %c0_69, %c0_70] : memref<4x1x8x16x4xbf16, #tpu.memory_space<vmem>>, vector<1x1x8x16x4xbf16>
    %72 = vector.shape_cast %71 : vector<1x1x8x16x4xbf16> to vector<8x16x4xbf16>
    %73 = vector.shape_cast %70 : vector<8x16x4xbf16> to vector<1x1x8x16x4xbf16>
    tpu.vector_store %arg6[%c1_66, %c0_67, %c0_68, %c0_69, %c0_70], %73 {strides = array<i32>} : memref<4x1x8x16x4xbf16, #tpu.memory_space<vmem>>, vector<1x1x8x16x4xbf16>,
    %cst_71 = arith.constant 0.000000e+00 : f32
    %74 = vector.broadcast %cst_71 : f32 to vector<128x4xf32>
    %75 = vector.extract_strided_slice %6 {offsets = [1, 0, 0], sizes = [8, 16, 4], strides = [1, 1, 1]} : vector<10x16x4xbf16> to vector<8x16x4xbf16>
    %76 = vector.shape_cast %75 : vector<8x16x4xbf16> to vector<128x4xbf16>
    %c2_72 = arith.constant 2 : index
    %c0_73 = arith.constant 0 : index
    %c0_74 = arith.constant 0 : index
    %c0_75 = arith.constant 0 : index
    %77 = vector.load %arg4[%c2_72, %c0_73, %c0_74, %c0_75] : memref<4x4x4x4xbf16, #tpu.memory_space<vmem>>, vector<1x1x4x4xbf16>
    %78 = vector.shape_cast %77 : vector<1x1x4x4xbf16> to vector<4x4xbf16>
    %cst_76 = arith.constant dense<0.000000e+00> : vector<128x4xf32>
    %79 = tpu.matmul %76, %78, %cst_76 {dimension_numbers = #tpu.dot_dimension_numbers<[1], [0], [0], [1], [0, 0, 1, 1], [], []>} : vector<128x4xbf16>, vector<4x4xbf16>, vector<128x4xf32> -> vector<128x4xf32>
    %80 = arith.addf %74, %79 : vector<128x4xf32>
    %81 = vector.extract_strided_slice %7 {offsets = [1, 0, 0], sizes = [8, 16, 4], strides = [1, 1, 1]} : vector<10x16x4xbf16> to vector<8x16x4xbf16>
    %82 = vector.shape_cast %81 : vector<8x16x4xbf16> to vector<128x4xbf16>
    %c2_77 = arith.constant 2 : index
    %c1_78 = arith.constant 1 : index
    %c0_79 = arith.constant 0 : index
    %c0_80 = arith.constant 0 : index
    %83 = vector.load %arg4[%c2_77, %c1_78, %c0_79, %c0_80] : memref<4x4x4x4xbf16, #tpu.memory_space<vmem>>, vector<1x1x4x4xbf16>
    %84 = vector.shape_cast %83 : vector<1x1x4x4xbf16> to vector<4x4xbf16>
    %cst_81 = arith.constant dense<0.000000e+00> : vector<128x4xf32>
    %85 = tpu.matmul %82, %84, %cst_81 {dimension_numbers = #tpu.dot_dimension_numbers<[1], [0], [0], [1], [0, 0, 1, 1], [], []>} : vector<128x4xbf16>, vector<4x4xbf16>, vector<128x4xf32> -> vector<128x4xf32>
    %86 = arith.addf %80, %85 : vector<128x4xf32>
    %87 = vector.extract_strided_slice %6 {offsets = [2, 0, 0], sizes = [8, 16, 4], strides = [1, 1, 1]} : vector<10x16x4xbf16> to vector<8x16x4xbf16>
    %88 = vector.shape_cast %87 : vector<8x16x4xbf16> to vector<128x4xbf16>
    %c2_82 = arith.constant 2 : index
    %c2_83 = arith.constant 2 : index
    %c0_84 = arith.constant 0 : index
    %c0_85 = arith.constant 0 : index
    %89 = vector.load %arg4[%c2_82, %c2_83, %c0_84, %c0_85] : memref<4x4x4x4xbf16, #tpu.memory_space<vmem>>, vector<1x1x4x4xbf16>
    %90 = vector.shape_cast %89 : vector<1x1x4x4xbf16> to vector<4x4xbf16>
    %cst_86 = arith.constant dense<0.000000e+00> : vector<128x4xf32>
    %91 = tpu.matmul %88, %90, %cst_86 {dimension_numbers = #tpu.dot_dimension_numbers<[1], [0], [0], [1], [0, 0, 1, 1], [], []>} : vector<128x4xbf16>, vector<4x4xbf16>, vector<128x4xf32> -> vector<128x4xf32>
    %92 = arith.addf %86, %91 : vector<128x4xf32>
    %93 = vector.extract_strided_slice %7 {offsets = [2, 0, 0], sizes = [8, 16, 4], strides = [1, 1, 1]} : vector<10x16x4xbf16> to vector<8x16x4xbf16>
    %94 = vector.shape_cast %93 : vector<8x16x4xbf16> to vector<128x4xbf16>
    %c2_87 = arith.constant 2 : index
    %c3_88 = arith.constant 3 : index
    %c0_89 = arith.constant 0 : index
    %c0_90 = arith.constant 0 : index
    %95 = vector.load %arg4[%c2_87, %c3_88, %c0_89, %c0_90] : memref<4x4x4x4xbf16, #tpu.memory_space<vmem>>, vector<1x1x4x4xbf16>
    %96 = vector.shape_cast %95 : vector<1x1x4x4xbf16> to vector<4x4xbf16>
    %cst_91 = arith.constant dense<0.000000e+00> : vector<128x4xf32>
    %97 = tpu.matmul %94, %96, %cst_91 {dimension_numbers = #tpu.dot_dimension_numbers<[1], [0], [0], [1], [0, 0, 1, 1], [], []>} : vector<128x4xbf16>, vector<4x4xbf16>, vector<128x4xf32> -> vector<128x4xf32>
    %98 = arith.addf %92, %97 : vector<128x4xf32>
    %99 = vector.broadcast %9 : vector<1x4xf32> to vector<128x4xf32>
    %100 = arith.addf %98, %99 : vector<128x4xf32>
    %101 = arith.truncf %100 : vector<128x4xf32> to vector<128x4xbf16>
    %102 = vector.shape_cast %101 : vector<128x4xbf16> to vector<8x16x4xbf16>
    %c2_92 = arith.constant 2 : index
    %c0_93 = arith.constant 0 : index
    %c0_94 = arith.constant 0 : index
    %c0_95 = arith.constant 0 : index
    %c0_96 = arith.constant 0 : index
    %103 = vector.load %arg6[%c2_92, %c0_93, %c0_94, %c0_95, %c0_96] : memref<4x1x8x16x4xbf16, #tpu.memory_space<vmem>>, vector<1x1x8x16x4xbf16>
    %104 = vector.shape_cast %103 : vector<1x1x8x16x4xbf16> to vector<8x16x4xbf16>
    %105 = vector.shape_cast %102 : vector<8x16x4xbf16> to vector<1x1x8x16x4xbf16>
    tpu.vector_store %arg6[%c2_92, %c0_93, %c0_94, %c0_95, %c0_96], %105 {strides = array<i32>} : memref<4x1x8x16x4xbf16, #tpu.memory_space<vmem>>, vector<1x1x8x16x4xbf16>,
    %cst_97 = arith.constant 0.000000e+00 : f32
    %106 = vector.broadcast %cst_97 : f32 to vector<128x4xf32>
    %107 = vector.extract_strided_slice %7 {offsets = [1, 0, 0], sizes = [8, 16, 4], strides = [1, 1, 1]} : vector<10x16x4xbf16> to vector<8x16x4xbf16>
    %108 = vector.shape_cast %107 : vector<8x16x4xbf16> to vector<128x4xbf16>
    %c3_98 = arith.constant 3 : index
    %c0_99 = arith.constant 0 : index
    %c0_100 = arith.constant 0 : index
    %c0_101 = arith.constant 0 : index
    %109 = vector.load %arg4[%c3_98, %c0_99, %c0_100, %c0_101] : memref<4x4x4x4xbf16, #tpu.memory_space<vmem>>, vector<1x1x4x4xbf16>
    %110 = vector.shape_cast %109 : vector<1x1x4x4xbf16> to vector<4x4xbf16>
    %cst_102 = arith.constant dense<0.000000e+00> : vector<128x4xf32>
    %111 = tpu.matmul %108, %110, %cst_102 {dimension_numbers = #tpu.dot_dimension_numbers<[1], [0], [0], [1], [0, 0, 1, 1], [], []>} : vector<128x4xbf16>, vector<4x4xbf16>, vector<128x4xf32> -> vector<128x4xf32>
    %112 = arith.addf %106, %111 : vector<128x4xf32>
    %113 = vector.extract_strided_slice %8 {offsets = [1, 0, 0], sizes = [8, 16, 4], strides = [1, 1, 1]} : vector<10x16x4xbf16> to vector<8x16x4xbf16>
    %114 = vector.shape_cast %113 : vector<8x16x4xbf16> to vector<128x4xbf16>
    %c3_103 = arith.constant 3 : index
    %c1_104 = arith.constant 1 : index
    %c0_105 = arith.constant 0 : index
    %c0_106 = arith.constant 0 : index
    %115 = vector.load %arg4[%c3_103, %c1_104, %c0_105, %c0_106] : memref<4x4x4x4xbf16, #tpu.memory_space<vmem>>, vector<1x1x4x4xbf16>
    %116 = vector.shape_cast %115 : vector<1x1x4x4xbf16> to vector<4x4xbf16>
    %cst_107 = arith.constant dense<0.000000e+00> : vector<128x4xf32>
    %117 = tpu.matmul %114, %116, %cst_107 {dimension_numbers = #tpu.dot_dimension_numbers<[1], [0], [0], [1], [0, 0, 1, 1], [], []>} : vector<128x4xbf16>, vector<4x4xbf16>, vector<128x4xf32> -> vector<128x4xf32>
    %118 = arith.addf %112, %117 : vector<128x4xf32>
    %119 = vector.extract_strided_slice %7 {offsets = [2, 0, 0], sizes = [8, 16, 4], strides = [1, 1, 1]} : vector<10x16x4xbf16> to vector<8x16x4xbf16>
    %120 = vector.shape_cast %119 : vector<8x16x4xbf16> to vector<128x4xbf16>
    %c3_108 = arith.constant 3 : index
    %c2_109 = arith.constant 2 : index
    %c0_110 = arith.constant 0 : index
    %c0_111 = arith.constant 0 : index
    %121 = vector.load %arg4[%c3_108, %c2_109, %c0_110, %c0_111] : memref<4x4x4x4xbf16, #tpu.memory_space<vmem>>, vector<1x1x4x4xbf16>
    %122 = vector.shape_cast %121 : vector<1x1x4x4xbf16> to vector<4x4xbf16>
    %cst_112 = arith.constant dense<0.000000e+00> : vector<128x4xf32>
    %123 = tpu.matmul %120, %122, %cst_112 {dimension_numbers = #tpu.dot_dimension_numbers<[1], [0], [0], [1], [0, 0, 1, 1], [], []>} : vector<128x4xbf16>, vector<4x4xbf16>, vector<128x4xf32> -> vector<128x4xf32>
    %124 = arith.addf %118, %123 : vector<128x4xf32>
    %125 = vector.extract_strided_slice %8 {offsets = [2, 0, 0], sizes = [8, 16, 4], strides = [1, 1, 1]} : vector<10x16x4xbf16> to vector<8x16x4xbf16>
    %126 = vector.shape_cast %125 : vector<8x16x4xbf16> to vector<128x4xbf16>
    %c3_113 = arith.constant 3 : index
    %c3_114 = arith.constant 3 : index
    %c0_115 = arith.constant 0 : index
    %c0_116 = arith.constant 0 : index
    %127 = vector.load %arg4[%c3_113, %c3_114, %c0_115, %c0_116] : memref<4x4x4x4xbf16, #tpu.memory_space<vmem>>, vector<1x1x4x4xbf16>
    %128 = vector.shape_cast %127 : vector<1x1x4x4xbf16> to vector<4x4xbf16>
    %cst_117 = arith.constant dense<0.000000e+00> : vector<128x4xf32>
    %129 = tpu.matmul %126, %128, %cst_117 {dimension_numbers = #tpu.dot_dimension_numbers<[1], [0], [0], [1], [0, 0, 1, 1], [], []>} : vector<128x4xbf16>, vector<4x4xbf16>, vector<128x4xf32> -> vector<128x4xf32>
    %130 = arith.addf %124, %129 : vector<128x4xf32>
    %131 = vector.broadcast %9 : vector<1x4xf32> to vector<128x4xf32>
    %132 = arith.addf %130, %131 : vector<128x4xf32>
    %133 = arith.truncf %132 : vector<128x4xf32> to vector<128x4xbf16>
    %134 = vector.shape_cast %133 : vector<128x4xbf16> to vector<8x16x4xbf16>
    %c3_118 = arith.constant 3 : index
    %c0_119 = arith.constant 0 : index
    %c0_120 = arith.constant 0 : index
    %c0_121 = arith.constant 0 : index
    %c0_122 = arith.constant 0 : index
    %135 = vector.load %arg6[%c3_118, %c0_119, %c0_120, %c0_121, %c0_122] : memref<4x1x8x16x4xbf16, #tpu.memory_space<vmem>>, vector<1x1x8x16x4xbf16>
    %136 = vector.shape_cast %135 : vector<1x1x8x16x4xbf16> to vector<8x16x4xbf16>
    %137 = vector.shape_cast %134 : vector<8x16x4xbf16> to vector<1x1x8x16x4xbf16>
    tpu.vector_store %arg6[%c3_118, %c0_119, %c0_120, %c0_121, %c0_122], %137 {strides = array<i32>} : memref<4x1x8x16x4xbf16, #tpu.memory_space<vmem>>, vector<1x1x8x16x4xbf16>,
    return
  }
  func.func @transform_0(%arg0: i32, %arg1: i32) -> (i32, i32, i32, i32) {
    %c0_i32 = arith.constant 0 : i32
    %c0_i32_0 = arith.constant 0 : i32
    %c0_i32_1 = arith.constant 0 : i32
    return %arg0, %arg1, %c0_i32, %c0_i32_0 : i32, i32, i32, i32
  }
  func.func @transform_1(%arg0: i32, %arg1: i32) -> (i32, i32, i32, i32) {
    %c1_i32 = arith.constant 1 : i32
    %0 = arith.addi %arg1, %c1_i32 : i32
    %c4_i32 = arith.constant 4 : i32
    %1 = arith.muli %0, %c4_i32 : i32
    %c0_i32 = arith.constant 0 : i32
    %c0_i32_0 = arith.constant 0 : i32
    %c0_i32_1 = arith.constant 0 : i32
    return %arg0, %1, %c0_i32, %c0_i32_0 : i32, i32, i32, i32
  }
  func.func @transform_2(%arg0: i32, %arg1: i32) -> (i32, i32, i32, i32) {
    %c0_i32 = arith.constant 0 : i32
    %c0_i32_0 = arith.constant 0 : i32
    %c0_i32_1 = arith.constant 0 : i32
    %c0_i32_2 = arith.constant 0 : i32
    %c0_i32_3 = arith.constant 0 : i32
    return %c0_i32, %c0_i32_0, %c0_i32_1, %c0_i32_2 : i32, i32, i32, i32
  }
  func.func @transform_3(%arg0: i32, %arg1: i32) -> (i32, i32) {
    %c0_i32 = arith.constant 0 : i32
    %c0_i32_0 = arith.constant 0 : i32
    %c0_i32_1 = arith.constant 0 : i32
    return %c0_i32, %c0_i32_0 : i32, i32
  }
  func.func @transform_4(%arg0: i32, %arg1: i32) -> (i32, i32, i32, i32, i32) {
    %c0_i32 = arith.constant 0 : i32
    %c0_i32_0 = arith.constant 0 : i32
    %c0_i32_1 = arith.constant 0 : i32
    %c0_i32_2 = arith.constant 0 : i32
    return %c0_i32, %arg0, %arg1, %c0_i32_0, %c0_i32_1 : i32, i32, i32, i32, i32
  }
}

</mosaic_0001>

<bundles_post_ra>
// kernel: upsample_block.1
= control target key start
LH: loop header
LB: loop body
LE: loop exit
PB: predicated region body
PF: predicated region fallthrough
CT: control target
= control target key end

     0   :  { %s2964_s15 = smov 0   ;;  %s2966_s16 = smov 0   ;;  %s3954_s0 = inlined_call_operand.vmem [shape: bf16[2,18,18,4], index: 0, kind: input, shape index: {}, may-alias: {0,1}]   ;;  %s3955_s1 = inlined_call_operand.vmem [shape: bf16[2,18,18,4], index: 1, kind: input, shape index: {}, may-alias: {0,1}]   ;;  %s3956_s2 = inlined_call_operand.vmem [shape: bf16[4,4,4,4], index: 2, kind: input, shape index: {}]   ;;  %s3957_s3 = inlined_call_operand.vmem [shape: f32[1,4], index: 3, kind: input, shape index: {}]   ;;  %s3958_s4 = inlined_call_operand.vmem [shape: bf16[4,2,16,16,4], index: 4, kind: output, shape index: {}]  }
   0x1   :  { %s2968_s17 = smov 0   ;;  %s2970_s18 = smov 0  }
   0x2   :  { %s2972_s19 = smov 0   ;;  %s2974_s20 = smov 0  }
   0x3   :  { %s2976_s21 = smov 0  }
   0x4 LB: > { %s23_s22 = sadd.s32 1, %s2929_s19  ;;  %s26_s23 = sadd.s32 1, %s2933_s20  ;;  %s2937_s21 = sphi %s2976_s21, %s14_s21   ;;  %s2933_s20 = sphi %s2974_s20, %s3969_s20   ;;  %s2929_s19 = sphi %s2972_s19, %s3968_s19   ;;  %s2925_s18 = sphi %s2970_s18, %s3967_s18   ;;  %s2921_s17 = sphi %s2968_s17, %s3966_s17   ;;  %s2917_s16 = sphi %s2966_s16, %s3965_s16   ;;  %s2913_s15 = sphi %s2964_s15, %s3964_s15  }
   0x5   : > { %p24_p0 = scmp.ge.s32.totalorder %s23_s22, 2  ;;  %s2537_s24 = sadd.s32 4294967295, %s2937_s21  }
   0x6   : > { %p147_p1 = scmp.ne.s32.totalorder %s2917_s16, %s2913_s15  ;;  %p148_p2 = scmp.eq.s32.totalorder %s2537_s24, 3 }
   0x7   : > { %s3971_s22 = smov (%p24_p0, %s23_s22), 0  ;;  %s3973_s23 = smov (!%p24_p0, %s26_s23), %s2933_s20 }
   0x8   : > { %s133_s25 = ssub.s32 %s2929_s19, %s3971_s22  ;;  %p28_p3 = scmp.ge.s32.totalorder %s3973_s23, 2 }
   0x9   : > { %p2543_p4 = scmp.ge.s32.totalorder %s2937_s21, 1  ;;  %p3010_p5 = por %p148_p2, %p147_p1 }
   0xa   : > { %p220_p6 = scmp.lt.s32.totalorder %s2937_s21, 5  ;;  %s3975_s23 = smov (%p28_p3, %s3973_s23), 0 }
   0xb   : > { %s132_s27 = ssub.s32 %s2933_s20, %s3975_s23  ;;  %s137_s29 = sadd.s32 1, %s2917_s16 }
   0xc   : > { %p221_p7 = pnand %p2543_p4, %p220_p6  ;;  %s134_s28 = sor.u32 %s133_s25, %s132_s27 }
   0xd   : > { %p135_p8 = scmp.eq.s32.totalorder %s134_s28, 0  ;;  %s3027_s7 = sshll.u32 (!%p221_p7), %s2921_s17, 3 }
   0xe   : > { %224 = sbr.rel (%p221_p7) target bundleno = 704 (0x2c0), region = 36  ;;  %p273_p9 = scmp.lt.s32.totalorder (!%p221_p7), %s2925_s18, 1 }
   0xf   : > { %s3021_s30 = scalar_select %p135_p8, %s2917_s16, %s137_s29  }
  0x10   : > { %p275_p10 = scmp.lt.s32.totalorder (!%p221_p7), %s3027_s7, 17 }
  0x13   : > { %vm656_vm0 = vcmask 1041408   ;;  %v2599_v0 = vld [vmem:[%s3956_s2 + $0x4] sm:$0x3]  ;;  %v409_v2 = vld [vmem:[%s3956_s2] sm:$0x3]  ;;  %s3036_s10 = scalar_select %p273_p9, %s2925_s18, 1 }
  0x14   : > { %v836_v1 = vsel %vm656_vm0, %v2599_v0, 0  ;;  %v774_v3 = vsel %vm656_vm0, %v409_v2, 0  ;;  %v2550_v4 = vld [vmem:[%s3956_s2 + $0x2] sm:$0x3]  ;;  %v2612_v5 = vld [vmem:[%s3956_s2 + $0x6] sm:$0x3] }
  0x15   : > { %845 = vmatpush.bf16.msra.mxu2 %v836_v1  ;;  %s276_s24 = scalar_select %p275_p10, %s3027_s7, 17  ;;  %783 = vmatpush.bf16.msra.mxu1 %v774_v3  ;;  %v658_v6 = vsel %vm656_vm0, %v2550_v4, 0  ;;  %v936_v7 = vsel %vm656_vm0, %v2612_v5, 0  ;;  %v2647_v8 = vld [vmem:[%s3956_s2 + $0xc] sm:$0x3]  ;;  %vm329_vm1 = vcmask 27648  }
  0x16   : > { %s2819_s28 = smul.u32 54, %s3036_s10  ;;  %667 = vmatpush.bf16.msra.mxu0 %v658_v6  ;;  %945 = vmatpush.bf16.msra.mxu3 %v936_v7  ;;  %v1288_v9 = vsel %vm656_vm0, %v2647_v8, 0  ;;  %v2657_v10 = vld [vmem:[%s3956_s2 + $0xe] sm:$0x3]  ;;  %v2630_v11 = vld [vmem:[%s3956_s2 + $0xa] sm:$0x3] }
  0x17   : > { %s2818_s29 = smul.u32 3, %s276_s24  ;;  %v1373_v12 = vsel %vm656_vm0, %v2657_v10, 0  ;;  %v1182_v13 = vsel %vm656_vm0, %v2630_v11, 0  ;;  %v2621_v14 = vld [vmem:[%s3956_s2 + $0x8] sm:$0x3]  ;;  %s2817_s24 = sadd.s32 8, %s3027_s7 }
  0x18   : > { %v1234_v15 = vsel %vm656_vm0, %v2621_v14, 0  ;;  %p293_p11 = scmp.lt.s32.totalorder %s2817_s24, 17  ;;  %vm332_vm2 = vcmask 24576   ;;  %vm410_vm3 = vsmask.f32 3328  ;;  %vm631_vm4 = vcmask 31744  }
  0x19   : > { %1297 = vmatpush.bf16.msrb.mxu2 %v1288_v9  ;;  %s279_s13 = sadd.s32 %s2819_s28, %s2818_s29  ;;  %1243 = vmatpush.bf16.msrb.mxu1 %v1234_v15  ;;  %vm411_vm5 = vsmask.f32 7440  ;;  %vm1072_vm7 = vcmask 1042432   ;;  %vm1073_vm8 = vcmask 1046532   ;;  %s2815_s27 = sshll.u32 (%p3010_p5), %s2921_s17, 4 }
  0x1a   : > { %1382 = vmatpush.bf16.msrb.mxu3 %v1373_v12  ;;  %1191 = vmatpush.bf16.msrb.mxu0 %v1182_v13  ;;  %s2546_s14 = sshll.u32 %s279_s13, 2  ;;  %s3977_s24 = smov (!%p293_p11, %s2817_s24), 17  ;;  %vm3117_vm6 = vmor %vm410_vm3, %vm411_vm5 }
  0x1b   : > { %s3071_s5 = scalar_lea.vmem %s3954_s0, %s2546_s14  ;;  %s2820_s7 = smul.u32 3, %s3977_s24  ;;  %vm3361_vm9 = vmor %vm1072_vm7, %vm1073_vm8 }
  0x1c   : > { %v308_v16 = vld [vmem:[%s3071_s5 + $0xc] sm:$0xf]  ;;  %v309_v17 = vld [vmem:[%s3071_s5 + $0x10] sm:$0xf]  ;;  %v305_v18 = vld [vmem:[%s3071_s5] sm:$0xf] }
  0x1d   : > { %334 = vst.msk [vmem:[#allocation2 + $0xc] sm:$0xf] %vm329_vm1, %v308_v16  ;;  %v306_v19 = vld [vmem:[%s3071_s5 + $0x4] sm:$0xf]  ;;  %v307_v20 = vld [vmem:[%s3071_s5 + $0x8] sm:$0x1]  ;;  %s3096_s29 = sadd.s32 %s2820_s7, %s2819_s28 }
  0x1e   : > { %335 = vst.msk [vmem:[#allocation2 + $0x10] sm:$0xf] %vm329_vm1, %v309_v17  ;;  %v310_v21 = vld [vmem:[%s3071_s5 + $0x14] sm:$0x1]  ;;  %v311_v22 = vld [vmem:[%s3071_s5 + $0x18] sm:$0xf] }
  0x1f   : > { %330 = vst.msk [vmem:[#allocation2] sm:$0xf] %vm329_vm1, %v305_v18  ;;  %v312_v23 = vld [vmem:[%s3071_s5 + $0x1c] sm:$0xf]  ;;  %v313_v24 = vld [vmem:[%s3071_s5 + $0x20] sm:$0x1] }
  0x20   : > { %331 = vst.msk [vmem:[#allocation2 + $0x4] sm:$0xf] %vm329_vm1, %v306_v19  ;;  %v314_v38 = vld [vmem:[%s3071_s5 + $0x24] sm:$0xf]  ;;  %v315_v48 = vld [vmem:[%s3071_s5 + $0x28] sm:$0xf] }
  0x21   : > { %333 = vst.msk [vmem:[#allocation2 + $0x8] sm:$0x1] %vm332_vm2, %v307_v20  ;;  %v316_v0 = vld [vmem:[%s3071_s5 + $0x2c] sm:$0x1]  ;;  %v317_v14 = vld [vmem:[%s3071_s5 + $0x30] sm:$0xf] }
  0x22   : > { %336 = vst.msk [vmem:[#allocation2 + $0x14] sm:$0x1] %vm332_vm2, %v310_v21  ;;  %v318_v18 = vld [vmem:[%s3071_s5 + $0x34] sm:$0xf]  ;;  %s2549_s10 = sshll.u32 %s3096_s29, 2 }
  0x23   : > { %337 = vst.msk [vmem:[#allocation2 + $0x18] sm:$0xf] %vm329_vm1, %v311_v22  ;;  %s3260_s8 = scalar_lea.vmem %s3955_s1, %s2549_s10 }
  0x24   : > { %v370_v25 = vld [vmem:[#allocation2 + $0xc] sm:$0xf]  ;;  %338 = vst.msk [vmem:[#allocation2 + $0x1c] sm:$0xf] %vm329_vm1, %v312_v23 }
  0x25   : > { %v3090_v26 = vld [vmem:[#allocation2 + $0xc] sm:$0xff]  ;;  %v438_v28 = vshrl.u32 %v370_v25, 16  ;;  %v441_v29 = vshll.u32 %v370_v25, 16  ;;  %339 = vst.msk [vmem:[#allocation2 + $0x20] sm:$0x1] %vm332_vm2, %v313_v24 }
  0x26   : > { %v3092_v27 = vld [vmem:[#allocation2 + $0x10] sm:$0xf]  ;;  %v368_v30 = vld [vmem:[#allocation2] sm:$0xf]  ;;  %2604 = vmatmul.msk.bf16.vlgmr.msra.gmra.mxu2 %vm631_vm4, %v3090_v26  ;;  %340 = vst.msk [vmem:[#allocation2 + $0x24] sm:$0xf] %vm329_vm1, %v314_v38 }
  0x27   : > { %v447_v31 = vshll.u32 %v3092_v27, 16  ;;  %v451_v32 = vshrl.u32 %v3092_v27, 16  ;;  %v2805_v33 = vld [vmem:[#allocation2] sm:$0xff]  ;;  %v414_v35 = vshrl.u32 %v368_v30, 16  ;;  %v417_v36 = vshll.u32 %v368_v30, 16 }
  0x28   : > { %v3103_v34 = vld [vmem:[#allocation2 + $0x4] sm:$0xf]  ;;  %v440_v37 = vrot.slane %v438_v28, 4  ;;  %v3106_v39 = vld [vmem:[#allocation2 + $0x8] sm:$0x1]  ;;  %v443_v42 = vrot.slane %v441_v29, 5  ;;  %2591 = vmatmul.msk.bf16.vlgmr.msra.gmra.mxu1 %vm631_vm4, %v2805_v33 }
  0x29   : > { %v423_v40 = vshll.u32 %v3103_v34, 16  ;;  %v427_v41 = vshrl.u32 %v3103_v34, 16  ;;  %v449_v43 = vrot.slane %v447_v31, 5  ;;  %v416_v44 = vrot.slane %v414_v35, 4  ;;  %v3112_v47 = vld [vmem:[#allocation2 + $0x14] sm:$0x1] }
  0x2a   : > { %v419_v45 = vrot.slane %v417_v36, 5  ;;  %v433_v46 = vshll.u32 %v3106_v39, 16  ;;  %v444_v51 = vor.u32 %v443_v42, %v440_v37  ;;  %v453_v52 = vrot.slane %v451_v32, 4  ;;  %v372_v53 = vld [vmem:[#allocation2 + $0x18] sm:$0xf] }
  0x2b   : > { %v425_v49 = vrot.slane %v423_v40, 5  ;;  %v429_v50 = vrot.slane %v427_v41, 4  ;;  %v457_v57 = vshll.u32 %v3112_v47, 16  ;;  %v3122_v58 = vld [vmem:[#allocation2 + $0x1c] sm:$0xf]  ;;  %v462_v59 = vshrl.u32 %v372_v53, 16 }
  0x2c   : > { %v420_v55 = vor.u32 %v419_v45, %v416_v44  ;;  %v435_v56 = vrot.slane %v433_v46, 5  ;;  %v445_v61 = vrot.slane %v444_v51, 4  ;;  %v454_v62 = vor.u32 %v453_v52, %v449_v43  ;;  %v3126_v3 = vld [vmem:[#allocation2 + $0x20] sm:$0x1]  ;;  %341 = vst.msk [vmem:[#allocation2 + $0x28] sm:$0xf] %vm329_vm1, %v315_v48 }
  0x2d   : > { %v430_v60 = vor.u32 %v429_v50, %v425_v49  ;;  %v465_v63 = vshll.u32 %v372_v53, 16  ;;  %v459_v2 = vrot.slane %v457_v57, 5  ;;  %v464_v4 = vrot.slane %v462_v59, 4  ;;  %342 = vst.msk [vmem:[#allocation2 + $0x2c] sm:$0x1] %vm332_vm2, %v316_v0  ;;  %v3149_v28 = vld [vmem:[#allocation2 + $0x18] sm:$0xff] }
  0x2e   : > { %v421_v1 = vrot.slane %v420_v55, 4  ;;  %v471_v5 = vshll.u32 %v3122_v58, 16  ;;  %v450_v7 = vsel %vm3117_vm6, %v445_v61, %v449_v43  ;;  %v455_v8 = vrot.slane %v454_v62, 4  ;;  %343 = vst.msk [vmem:[#allocation2 + $0x30] sm:$0xf] %vm329_vm1, %v317_v14 }
  0x2f   : > { %v431_v6 = vrot.slane %v430_v60, 4  ;;  %v467_v9 = vrot.slane %v465_v63, 5  ;;  %v609_v11 = vunpack.c.l.b16 %v450_v7  ;;  %v475_v13 = vshrl.u32 %v3122_v58, 16  ;;  %344 = vst.msk [vmem:[#allocation2 + $0x34] sm:$0xf] %vm329_vm1, %v318_v18 }
  0x30   : > { %v426_v10 = vsel %vm3117_vm6, %v421_v1, %v425_v49  ;;  %v473_v12 = vrot.slane %v471_v5, 5  ;;  %v460_v17 = vsel %vm3117_vm6, %v455_v8, %v459_v2  ;;  %v481_v23 = vshll.u32 %v3126_v3, 16  ;;  %v319_v30 = vld [vmem:[%s3071_s5 + $0x38] sm:$0x1]  ;;  %v374_v35 = vld [vmem:[#allocation2 + $0x24] sm:$0xf] }
  0x31   : > { %v436_v15 = vsel %vm3117_vm6, %v431_v6, %v435_v56  ;;  %v607_v16 = vunpack.c.l.b16 %v426_v10  ;;  %v610_v20 = vunpack.c.l.b16 %v460_v17  ;;  %v468_v21 = vor.u32 %v467_v9, %v464_v4  ;;  %345 = vst.msk [vmem:[#allocation2 + $0x38] sm:$0x1] %vm332_vm2, %v319_v30  ;;  %v320_v51 = vld [vmem:[%s3071_s5 + $0x3c] sm:$0xf]  ;;  %v321_v52 = vld [vmem:[%s3071_s5 + $0x40] sm:$0xf] }
  0x32   : > { %v608_v19 = vunpack.c.l.b16 %v436_v15  ;;  %v477_v22 = vrot.slane %v475_v13, 4  ;;  %v483_v33 = vrot.slane %v481_v23, 5  ;;  %v486_v38 = vshrl.u32 %v374_v35, 16  ;;  %346 = vst.msk [vmem:[#allocation2 + $0x3c] sm:$0xf] %vm329_vm1, %v320_v51 }
  0x33   : > { %v3147_v25 = vpack.c.b16 %v610_v20, %v609_v11  ;;  %v469_v31 = vrot.slane %v468_v21, 4  ;;  %v3159_v36 = vld [vmem:[#allocation2 + $0x28] sm:$0xf]  ;;  %v489_v41 = vshll.u32 %v374_v35, 16  ;;  %347 = vst.msk [vmem:[#allocation2 + $0x40] sm:$0xf] %vm329_vm1, %v321_v52 }
  0x34   : > { %v3145_v24 = vpack.c.b16 %v608_v19, %v607_v16  ;;  %v478_v29 = vor.u32 %v477_v22, %v473_v12  ;;  %v495_v42 = vshll.u32 %v3159_v36, 16  ;;  %v499_v43 = vshrl.u32 %v3159_v36, 16  ;;  %v3178_v59 = vld [vmem:[#allocation2 + $0x24] sm:$0xff]  ;;  %v324_v17 = vld [vmem:[%s3071_s5 + $0x4c] sm:$0xf] }
  0x35   : > { %2613 = vmatmul.msk.bf16.vlgmr.msra.gmra.mxu3 %vm631_vm4, %v3147_v25  ;;  %v474_v37 = vsel %vm3117_vm6, %v469_v31, %v473_v12  ;;  %v488_v46 = vrot.slane %v486_v38, 4  ;;  %v491_v48 = vrot.slane %v489_v41, 5  ;;  %v322_v60 = vld [vmem:[%s3071_s5 + $0x44] sm:$0x1]  ;;  %v376_v0 = vld [vmem:[#allocation2 + $0x30] sm:$0xf] }
  0x36   : > { %2551 = vmatmul.msk.bf16.vlgmr.msra.gmra.mxu0 %vm631_vm4, %v3145_v24  ;;  %v479_v32 = vrot.slane %v478_v29, 4  ;;  %2605 = vmatmul.msk.bf16.gmra.mxu2 %vm631_vm4, %v3149_v28  ;;  %v611_v44 = vunpack.c.l.b16 %v474_v37  ;;  %v497_v49 = vrot.slane %v495_v42, 5  ;;  %v501_v50 = vrot.slane %v499_v43, 4  ;;  %348 = vst.msk [vmem:[#allocation2 + $0x44] sm:$0x1] %vm332_vm2, %v322_v60  ;;  %v3207_v22 = vld [vmem:[#allocation2 + $0x30] sm:$0xff] }
  0x37   : > { %v492_v55 = vor.u32 %v491_v48, %v488_v46  ;;  %v3188_v1 = vld [vmem:[#allocation2 + $0x34] sm:$0xf]  ;;  %v510_v2 = vshrl.u32 %v376_v0, 16  ;;  %v513_v4 = vshll.u32 %v376_v0, 16  ;;  %v323_v16 = vld [vmem:[%s3071_s5 + $0x48] sm:$0xf] }
  0x38   : > { %2592 = vmatmul.msk.bf16.gmra.mxu1 %vm631_vm4, %v3090_v26  ;;  %v484_v40 = vsel %vm3117_vm6, %v479_v32, %v483_v33  ;;  %v3169_v26 = vld [vmem:[#allocation2 + $0x2c] sm:$0x1]  ;;  %v502_v56 = vor.u32 %v501_v50, %v497_v49  ;;  %v519_v7 = vshll.u32 %v3188_v1, 16  ;;  %v523_v8 = vshrl.u32 %v3188_v1, 16  ;;  %v3198_v15 = vld [vmem:[#allocation2 + $0x38] sm:$0x1] }
  0x39   : > { %v612_v45 = vunpack.c.l.b16 %v484_v40  ;;  %v505_v57 = vshll.u32 %v3169_v26, 16  ;;  %v493_v61 = vrot.slane %v492_v55, 4  ;;  %v512_v11 = vrot.slane %v510_v2, 4  ;;  %349 = vst.msk [vmem:[#allocation2 + $0x48] sm:$0xf] %vm329_vm1, %v323_v16 }
  0x3a   : > { %v503_v62 = vrot.slane %v502_v56, 4  ;;  %v515_v12 = vrot.slane %v513_v4, 5  ;;  %v521_v13 = vrot.slane %v519_v7, 5  ;;  %v525_v14 = vrot.slane %v523_v8, 4  ;;  %350 = vst.msk [vmem:[#allocation2 + $0x4c] sm:$0xf] %vm329_vm1, %v324_v17 }
  0x3b   : > { %v3174_v53 = vpack.c.b16 %v612_v45, %v611_v44  ;;  %v507_v63 = vrot.slane %v505_v57, 5  ;;  %v498_v5 = vsel %vm3117_vm6, %v493_v61, %v497_v49  ;;  %v529_v21 = vshll.u32 %v3198_v15, 16  ;;  %v325_v23 = vld [vmem:[%s3071_s5 + $0x50] sm:$0x1]  ;;  %v378_v29 = vld [vmem:[#allocation2 + $0x3c] sm:$0xf] }
  0x3c   : > { %v613_v9 = vunpack.c.l.b16 %v498_v5  ;;  %v516_v19 = vor.u32 %v515_v12, %v512_v11  ;;  %v526_v20 = vor.u32 %v525_v14, %v521_v13  ;;  %351 = vst.msk [vmem:[#allocation2 + $0x50] sm:$0x1] %vm332_vm2, %v325_v23  ;;  %v3215_v30 = vld [vmem:[#allocation2 + $0x40] sm:$0xf]  ;;  %v534_v35 = vshrl.u32 %v378_v29, 16 }
  0x3d   : > { %v508_v6 = vsel %vm3117_vm6, %v503_v62, %v507_v63  ;;  %v531_v33 = vrot.slane %v529_v21, 5  ;;  %v537_v37 = vshll.u32 %v378_v29, 16  ;;  %v543_v38 = vshll.u32 %v3215_v30, 16  ;;  %v3227_v50 = vld [vmem:[#allocation2 + $0x44] sm:$0x1]  ;;  %v3236_v61 = vld [vmem:[#allocation2 + $0x3c] sm:$0xff] }
  0x3e   : > { %v614_v10 = vunpack.c.l.b16 %v508_v6  ;;  %v517_v31 = vrot.slane %v516_v19, 4  ;;  %v527_v32 = vrot.slane %v526_v20, 4  ;;  %v547_v40 = vshrl.u32 %v3215_v30, 16  ;;  %v326_v51 = vld [vmem:[%s3071_s5 + $0x54] sm:$0xf] }
  0x3f   : > { %v536_v43 = vrot.slane %v534_v35, 4  ;;  %v539_v44 = vrot.slane %v537_v37, 5  ;;  %v545_v45 = vrot.slane %v543_v38, 5  ;;  %v327_v52 = vld [vmem:[%s3071_s5 + $0x58] sm:$0xf]  ;;  %v553_v57 = vshll.u32 %v3227_v50, 16 }
  0x40   : > { %v3203_v18 = vpack.c.b16 %v614_v10, %v613_v9  ;;  %v522_v41 = vsel %vm3117_vm6, %v517_v31, %v521_v13  ;;  %v532_v42 = vsel %vm3117_vm6, %v527_v32, %v531_v33  ;;  %v549_v46 = vrot.slane %v547_v40, 4  ;;  %352 = vst.msk [vmem:[#allocation2 + $0x54] sm:$0xf] %vm329_vm1, %v326_v51  ;;  %v328_v62 = vld [vmem:[%s3071_s5 + $0x5c] sm:$0x1]  ;;  %s264_s5 = sand.u32 1, %s2913_s15  }
  0x41   : > { %v615_v48 = vunpack.c.l.b16 %v522_v41  ;;  %v616_v49 = vunpack.c.l.b16 %v532_v42  ;;  %v540_v55 = vor.u32 %v539_v44, %v536_v43  ;;  %353 = vst.msk [vmem:[#allocation2 + $0x58] sm:$0xf] %vm329_vm1, %v327_v52  ;;  %v555_v2 = vrot.slane %v553_v57, 5  ;;  %v380_v4 = vld [vmem:[#allocation2 + $0x48] sm:$0xf]  ;;  %s2544_s10 = sshll.u32 %s264_s5, 8 }
  0x42   : > { %v550_v56 = vor.u32 %v549_v46, %v545_v45  ;;  %354 = vst.msk [vmem:[#allocation2 + $0x5c] sm:$0x1] %vm332_vm2, %v328_v62  ;;  %v3244_v5 = vld [vmem:[#allocation2 + $0x4c] sm:$0xf]  ;;  %v558_v8 = vshrl.u32 %v380_v4, 16  ;;  %v561_v9 = vshll.u32 %v380_v4, 16 }
  0x43   : > { %v3233_v60 = vpack.c.b16 %v616_v49, %v615_v48  ;;  %v541_v63 = vrot.slane %v540_v55, 4  ;;  %v567_v10 = vshll.u32 %v3244_v5, 16  ;;  %v571_v11 = vshrl.u32 %v3244_v5, 16  ;;  %v3262_v20 = vld [vmem:[#allocation2 + $0x50] sm:$0x1]  ;;  %v3271_v35 = vld [vmem:[#allocation2 + $0x48] sm:$0xff] }
  0x44   : > { %v551_v0 = vrot.slane %v550_v56, 4  ;;  %v560_v14 = vrot.slane %v558_v8, 4  ;;  %v563_v16 = vrot.slane %v561_v9, 5  ;;  %v355_v21 = vld [vmem:[%s3260_s8] sm:$0xf]  ;;  %v577_v33 = vshll.u32 %v3262_v20, 16 }
  0x45   : > { %2614 = vmatmul.msk.bf16.gmra.mxu3 %vm631_vm4, %v3174_v53  ;;  %v546_v6 = vsel %vm3117_vm6, %v541_v63, %v545_v45  ;;  %v569_v17 = vrot.slane %v567_v10, 5  ;;  %v573_v19 = vrot.slane %v571_v11, 4  ;;  %v356_v23 = vld [vmem:[%s3260_s8 + $0x4] sm:$0xf]  ;;  %362 = vst.msk [vmem:[#allocation2 + $0x60] sm:$0xf] %vm329_vm1, %v355_v21 }
  0x46   : > { %2552 = vmatmul.msk.bf16.gmra.mxu0 %vm631_vm4, %v3147_v25  ;;  %2606 = vmatmul.msk.bf16.gmra.mxu2 %vm631_vm4, %v3178_v59  ;;  %v556_v7 = vsel %vm3117_vm6, %v551_v0, %v555_v2  ;;  %v617_v12 = vunpack.c.l.b16 %v546_v6  ;;  %v564_v31 = vor.u32 %v563_v16, %v560_v14  ;;  %363 = vst.msk [vmem:[#allocation2 + $0x64] sm:$0xf] %vm329_vm1, %v356_v23  ;;  %v357_v37 = vld [vmem:[%s3260_s8 + $0x8] sm:$0x1]  ;;  %v579_v41 = vrot.slane %v577_v33, 5  ;;  %s3397_s15 = scalar_lea.vmem [#allocation3], %s2544_s10 }
  0x47   : > { %v618_v13 = vunpack.c.l.b16 %v556_v7  ;;  %v574_v32 = vor.u32 %v573_v19, %v569_v17  ;;  %364 = vst.msk [vmem:[#allocation2 + $0x68] sm:$0x1] %vm332_vm2, %v357_v37  ;;  %v382_v42 = vld [vmem:[#allocation2 + $0x54] sm:$0xf]  ;;  %s2794_s5 = sshll.u32 (%p3010_p5), %s2925_s18, 5 }
  0x48   : > { %2593 = vmatmul.msk.bf16.gmra.mxu1 %vm631_vm4, %v3149_v28  ;;  %v565_v38 = vrot.slane %v564_v31, 4  ;;  %v3281_v43 = vld [vmem:[#allocation2 + $0x58] sm:$0xf]  ;;  %v582_v46 = vshrl.u32 %v382_v42, 16  ;;  %v585_v48 = vshll.u32 %v382_v42, 16  ;;  %s2146_s7 = sadd.s32 (%p3010_p5), %s2815_s27, %s2794_s5 }
  0x49   : > { %v3267_v29 = vpack.c.b16 %v618_v13, %v617_v12  ;;  %v575_v40 = vrot.slane %v574_v32, 4  ;;  %v591_v49 = vshll.u32 %v3281_v43, 16  ;;  %v595_v51 = vshrl.u32 %v3281_v43, 16  ;;  %v3291_v0 = vld [vmem:[#allocation2 + $0x5c] sm:$0x1]  ;;  %v3296_v8 = vld [vmem:[#allocation2 + $0x54] sm:$0xff] }
  0x4a   : > { %v570_v44 = vsel %vm3117_vm6, %v565_v38, %v569_v17  ;;  %v584_v56 = vrot.slane %v582_v46, 4  ;;  %v587_v57 = vrot.slane %v585_v48, 5  ;;  %v601_v7 = vshll.u32 %v3291_v0, 16  ;;  %s2795_s29 = sshll.u32 (%p3010_p5), %s2146_s7, 2 }
  0x4b   : > { %v580_v45 = vsel %vm3117_vm6, %v575_v40, %v579_v41  ;;  %v619_v52 = vunpack.c.l.b16 %v570_v44  ;;  %v593_v62 = vrot.slane %v591_v49, 5  ;;  %v597_v63 = vrot.slane %v595_v51, 4  ;;  %v2700_v49 = vld [vmem:[%s3956_s2 + $0x14] sm:$0x3]  ;;  %s3869_s28 = scalar_lea.vmem (%p3010_p5), %s3958_s4, %s2795_s29 }
  0x4c   : > { %v620_v55 = vunpack.c.l.b16 %v580_v45  ;;  %v588_v4 = vor.u32 %v587_v57, %v584_v56  ;;  %v384_v9 = vld [vmem:[#allocation2 + $0x60] sm:$0xf]  ;;  %v603_v12 = vrot.slane %v601_v7, 5  ;;  %v2713_v56 = vld [vmem:[%s3956_s2 + $0x16] sm:$0x3] }
  0x4d   : > { %v598_v6 = vor.u32 %v597_v63, %v593_v62  ;;  %v3304_v13 = vld [vmem:[#allocation2 + $0x64] sm:$0xf]  ;;  %v904_v14 = vshrl.u32 %v384_v9, 16  ;;  %v907_v16 = vshll.u32 %v384_v9, 16  ;;  %v2683_v57 = vld [vmem:[%s3956_s2 + $0x12] sm:$0x3] }
  0x4e   : > { %v3293_v2 = vpack.c.b16 %v620_v55, %v619_v52  ;;  %v589_v10 = vrot.slane %v588_v4, 4  ;;  %v913_v21 = vshll.u32 %v3304_v13, 16  ;;  %v917_v23 = vshrl.u32 %v3304_v13, 16  ;;  %v3314_v38 = vld [vmem:[#allocation2 + $0x68] sm:$0x1]  ;;  %v3319_v48 = vld [vmem:[#allocation2 + $0x60] sm:$0xff] }
  0x4f   : > { %v599_v11 = vrot.slane %v598_v6, 4  ;;  %v906_v31 = vrot.slane %v904_v14, 4  ;;  %v909_v32 = vrot.slane %v907_v16, 5  ;;  %v923_v44 = vshll.u32 %v3314_v38, 16  ;;  %v398_v16 = vld [vmem:[#allocation2] sm:$0xe] }
  0x50   : > { %v594_v17 = vsel %vm3117_vm6, %v589_v10, %v593_v62  ;;  %v915_v40 = vrot.slane %v913_v21, 5  ;;  %v919_v41 = vrot.slane %v917_v23, 4  ;;  %v1608_v55 = vsel %vm656_vm0, %v2700_v49, 0  ;;  %v2682_v62 = vld [vmem:[%s3956_s2 + $0x10] sm:$0x3] }
  0x51   : > { %v604_v19 = vsel %vm3117_vm6, %v599_v11, %v603_v12  ;;  %v621_v33 = vunpack.c.l.b16 %v594_v17  ;;  %v910_v42 = vor.u32 %v909_v32, %v906_v31  ;;  %v925_v52 = vrot.slane %v923_v44, 5  ;;  %1617 = vmatpush.bf16.msra.mxu2 %v1608_v55  ;;  %v399_v21 = vld [vmem:[#allocation2 + $0xc] sm:$0xe] }
  0x52   : > { %v622_v37 = vunpack.c.l.b16 %v604_v19  ;;  %v920_v46 = vor.u32 %v919_v41, %v915_v40  ;;  %v1708_v4 = vsel %vm656_vm0, %v2713_v56, 0  ;;  %v1494_v6 = vsel %vm656_vm0, %v2683_v57, 0 }
  0x53   : > { %v911_v51 = vrot.slane %v910_v42, 4  ;;  %v1546_v7 = vsel %vm656_vm0, %v2682_v62, 0  ;;  %1717 = vmatpush.bf16.msra.mxu3 %v1708_v4  ;;  %1503 = vmatpush.bf16.msra.mxu0 %v1494_v6  ;;  %v1077_v17 = vrot.slane %v3103_v34, 5  ;;  %v1084_v19 = vrot.slane %v3092_v27, 5  ;;  %v400_v6 = vld [vmem:[#allocation2 + $0x18] sm:$0xe] }
  0x54   : > { %v3317_v45 = vpack.c.b16 %v622_v37, %v621_v33  ;;  %v921_v63 = vrot.slane %v920_v46, 4  ;;  %1555 = vmatpush.bf16.msra.mxu1 %v1546_v7  ;;  %v1080_v23 = vrot.slane %v3106_v39, 5  ;;  %v2622_v31 = vrot.slane %v398_v16, 9  ;;  %v3386_v16 = vld [vmem:[%s3957_s3] ss:$0 sm:$0xff] }
  0x55   : > { %2615 = vmatmul.msk.bf16.gmra.mxu3 %vm631_vm4, %v3203_v18  ;;  %v916_v9 = vsel %vm3117_vm6, %v911_v51, %v915_v40  ;;  %v1079_v33 = vrot.slane %v1077_v17, 4  ;;  %v2623_v37 = vrot.slane %v399_v21, 9  ;;  %v1086_v40 = vrot.slane %v1084_v19, 4 }
  0x56   : > { %2553 = vmatmul.msk.bf16.gmra.mxu0 %vm631_vm4, %v3174_v53  ;;  %2607 = vmatmul.msk.bf16.gmra.mxu2 %vm631_vm4, %v3207_v22  ;;  %v926_v10 = vsel %vm3117_vm6, %v921_v63, %v925_v52  ;;  %v929_v11 = vunpack.c.l.b16 %v916_v9  ;;  %v1087_v34 = vrot.slane %v3112_v47, 5  ;;  %v1078_v41 = vsel %vm3361_vm9, %v2622_v31, %v1077_v17 }
  0x57   : > { %v930_v12 = vunpack.c.l.b16 %v926_v10  ;;  %v1081_v42 = vsel %vm3361_vm9, %v1079_v33, %v1080_v23  ;;  %v1085_v47 = vsel %vm3361_vm9, %v2623_v37, %v1084_v19  ;;  %v1133_v46 = vunpack.c.l.b16 %v1078_v41 }
  0x58   : > { %2594 = vmatmul.msk.bf16.gmra.mxu1 %vm631_vm4, %v3178_v59  ;;  %v1088_v44 = vsel %vm3361_vm9, %v1086_v40, %v1087_v34  ;;  %v1134_v49 = vunpack.c.l.b16 %v1081_v42  ;;  %v1135_v51 = vunpack.c.l.b16 %v1085_v47  ;;  %v1091_v63 = vrot.slane %v3122_v58, 5 }
  0x59   : > { %v3349_v14 = vpack.c.b16 %v930_v12, %v929_v11  ;;  %v1136_v52 = vunpack.c.l.b16 %v1088_v44  ;;  %v2624_v10 = vrot.slane %v400_v6, 9  ;;  %v1094_v12 = vrot.slane %v3126_v3, 5 }
  0x5a   : > { %v1093_v11 = vrot.slane %v1091_v63, 4  ;;  %v1101_v6 = vrot.slane %v3169_v26, 5 }
  0x5b   : > { %v3375_v56 = vpack.c.b16 %v1136_v52, %v1135_v51  ;;  %v1092_v23 = vsel %vm3361_vm9, %v2624_v10, %v1091_v63 }
  0x5c   : > { %v1095_v3 = vsel %vm3361_vm9, %v1093_v11, %v1094_v12  ;;  %v1137_v37 = vunpack.c.l.b16 %v1092_v23 }
  0x5d   : > { %v1138_v40 = vunpack.c.l.b16 %v1095_v3 }
  0x5f   : > { %v3401_v47 = vpack.c.b16 %v1138_v40, %v1137_v37 }
  0x65   : > { %2616 = vmatmul.msk.bf16.gmra.mxu3 %vm631_vm4, %v3233_v60 }
  0x66   : > { %2554 = vmatmul.msk.bf16.gmra.mxu0 %vm631_vm4, %v3203_v18  ;;  %2608 = vmatmul.msk.bf16.gmra.mxu2 %vm631_vm4, %v3236_v61 }
  0x68   : > { %2595 = vmatmul.msk.bf16.gmra.mxu1 %vm631_vm4, %v3207_v22 }
  0x75   : > { %2617 = vmatmul.msk.bf16.gmra.mxu3 %vm631_vm4, %v3267_v29 }
  0x76   : > { %2555 = vmatmul.msk.bf16.gmra.mxu0 %vm631_vm4, %v3233_v60  ;;  %2609 = vmatmul.msk.bf16.gmra.mxu2 %vm631_vm4, %v3271_v35 }
  0x78   : > { %2596 = vmatmul.msk.bf16.gmra.mxu1 %vm631_vm4, %v3236_v61 }
  0x85   : > { %2618 = vmatmul.msk.bf16.gmra.mxu3 %vm631_vm4, %v3293_v2 }
  0x86   : > { %2556 = vmatmul.msk.bf16.gmra.mxu0 %vm631_vm4, %v3267_v29  ;;  %2610 = vmatmul.msk.bf16.gmra.mxu2 %vm631_vm4, %v3296_v8 }
  0x88   : > { %2597 = vmatmul.msk.bf16.gmra.mxu1 %vm631_vm4, %v3271_v35 }
  0x95   : > { %2619 = vmatmul.msk.bf16.gmra.mxu3 %vm631_vm4, %v3317_v45 }
  0x96   : > { %2557 = vmatmul.msk.bf16.gmra.mxu0 %vm631_vm4, %v3293_v2  ;;  %2611 = vmatmul.msk.bf16.gmra.mxu2 %vm631_vm4, %v3319_v48 }
  0x98   : > { %2598 = vmatmul.msk.bf16.gmra.mxu1 %vm631_vm4, %v3296_v8 }
  0xa5   : > { %2620 = vmatmul.msk.bf16.gmra.mxu3 %vm631_vm4, %v3349_v14  ;;  %v785_v32 = vpop.f32.mrf.mxu1 }
  0xa6   : > { %2558 = vmatmul.msk.bf16.gmra.mxu0 %vm631_vm4, %v3317_v45  ;;  %2648 = vmatmul.msk.bf16.vlgmr.msrb.gmra.mxu2 %vm631_vm4, %v3147_v25 }
  0xa8   : > { %2639 = vmatmul.msk.bf16.vlgmr.msrb.gmra.mxu1 %vm631_vm4, %v3145_v24  ;;  %v1149_v24 = vpack.c.b16 %v1134_v49, %v1133_v46  ;;  %v1098_v49 = vrot.slane %v3159_v36, 5 }
  0xa9   : > { %v847_v39 = vpop.f32.mrf.mxu2 }
  0xad   : > { %v787_v55 = vpop.f32.mrf.mxu1 }
  0xb1   : > { %v849_v62 = vpop.f32.mrf.mxu2 }
  0xb3   : > { %v669_v57 = vpop.f32.mrf.mxu0 }
  0xb4   : > { %v786_v4 = vadd.f32 %v785_v32, %v669_v57 }
  0xb5   : > { %2658 = vmatmul.msk.bf16.vlgmr.msrb.gmra.mxu3 %vm631_vm4, %v3375_v56  ;;  %v790_v9 = vpop.f32.mrf.mxu1 }
  0xb6   : > { %2631 = vmatmul.msk.bf16.vlgmr.msrb.gmra.mxu0 %vm631_vm4, %v1149_v24  ;;  %v887_v7 = vadd.f32 %v847_v39, %v786_v4  ;;  %2649 = vmatmul.msk.bf16.gmra.mxu2 %vm631_vm4, %v3174_v53  ;;  %v1100_v4 = vrot.slane %v1098_v49, 4 }
  0xb8   : > { %v947_v58 = vpop.f32.mrf.mxu3  ;;  %2640 = vmatmul.msk.bf16.gmra.mxu1 %vm631_vm4, %v3147_v25  ;;  %v1102_v12 = vsel %vm3361_vm9, %v1100_v4, %v1101_v6 }
  0xb9   : > { %v987_v17 = vadd.f32 %v947_v58, %v887_v7  ;;  %v852_v21 = vpop.f32.mrf.mxu2 }
  0xbb   : > { %v671_v19 = vpop.f32.mrf.mxu0  ;;  %v1006_v31 = vadd.f32 %v3386_v16, %v987_v17 }
  0xbc   : > { %v788_v32 = vadd.f32 %v787_v55, %v671_v19  ;;  %v401_v55 = vld [vmem:[#allocation2 + $0x24] sm:$0xe] }
  0xbd   : > { %v1022_v33 = vpack.c.bf16 %v1006_v31, %v1006_v31  ;;  %v792_v34 = vpop.f32.mrf.mxu1  ;;  %v2625_v63 = vrot.slane %v401_v55, 9  ;;  %v1108_v55 = vrot.slane %v3198_v15, 5 }
  0xbe   : > { %v888_v39 = vadd.f32 %v849_v62, %v788_v32 }
  0xbf   : > { %1038 = vst.msk [vmem:[%s3397_s15] sm:$0xf] %vm329_vm1, %v1022_v33  ;;  %v1099_v11 = vsel %vm3361_vm9, %v2625_v63, %v1098_v49 }
  0xc0   : > { %v949_v41 = vpop.f32.mrf.mxu3  ;;  %v1139_v19 = vunpack.c.l.b16 %v1099_v11 }
  0xc1   : > { %v988_v42 = vadd.f32 %v949_v41, %v888_v39  ;;  %v854_v46 = vpop.f32.mrf.mxu2  ;;  %v1105_v39 = vrot.slane %v3188_v1, 5 }
  0xc3   : > { %v674_v44 = vpop.f32.mrf.mxu0  ;;  %v1007_v51 = vadd.f32 %v3386_v16, %v988_v42 }
  0xc4   : > { %v791_v52 = vadd.f32 %v790_v9, %v674_v44 }
  0xc5   : > { %v1023_v24 = vpack.c.bf16 %v1007_v51, %v1007_v51  ;;  %2659 = vmatmul.msk.bf16.gmra.mxu3 %vm631_vm4, %v3401_v47  ;;  %v795_v62 = vpop.f32.mrf.mxu1 }
  0xc6   : > { %2632 = vmatmul.msk.bf16.gmra.mxu0 %vm631_vm4, %v3375_v56  ;;  %v889_v57 = vadd.f32 %v852_v21, %v791_v52  ;;  %2650 = vmatmul.msk.bf16.gmra.mxu2 %vm631_vm4, %v3203_v18  ;;  %v1140_v21 = vunpack.c.l.b16 %v1102_v12  ;;  %v1107_v52 = vrot.slane %v1105_v39, 4 }
  0xc7   : > { %1039 = vst.msk [vmem:[%s3397_s15 + $0x4] sm:$0xf] %vm329_vm1, %v1023_v24 }
  0xc8   : > { %v952_v36 = vpop.f32.mrf.mxu3  ;;  %2641 = vmatmul.msk.bf16.gmra.mxu1 %vm631_vm4, %v3174_v53  ;;  %v3423_v33 = vpack.c.b16 %v1140_v21, %v1139_v19  ;;  %v1109_v4 = vsel %vm3361_vm9, %v1107_v52, %v1108_v55  ;;  %v1112_v21 = vrot.slane %v3215_v30, 5 }
  0xc9   : > { %v989_v7 = vadd.f32 %v952_v36, %v889_v57  ;;  %v857_v10 = vpop.f32.mrf.mxu2 }
  0xcb   : > { %v676_v9 = vpop.f32.mrf.mxu0  ;;  %v1008_v26 = vadd.f32 %v3386_v16, %v989_v7 }
  0xcc   : > { %v793_v58 = vadd.f32 %v792_v34, %v676_v9  ;;  %v402_v34 = vld [vmem:[#allocation2 + $0x30] sm:$0xe]  ;;  %v1142_v9 = vunpack.c.l.b16 %v1109_v4 }
  0xcd   : > { %v1024_v17 = vpack.c.bf16 %v1008_v26, %v1008_v26  ;;  %v797_v23 = vpop.f32.mrf.mxu1  ;;  %v2626_v51 = vrot.slane %v402_v34, 9 }
  0xce   : > { %v890_v3 = vadd.f32 %v854_v46, %v793_v58 }
  0xcf   : > { %1040 = vst.msk [vmem:[%s3397_s15 + $0x8] sm:$0xf] %vm329_vm1, %v1024_v17  ;;  %v1106_v63 = vsel %vm3361_vm9, %v2626_v51, %v1105_v39 }
  0xd0   : > { %v954_v31 = vpop.f32.mrf.mxu3  ;;  %v1141_v7 = vunpack.c.l.b16 %v1106_v63 }
  0xd1   : > { %v990_v32 = vadd.f32 %v954_v31, %v890_v3  ;;  %v859_v40 = vpop.f32.mrf.mxu2 }
  0xd2   : > { %v3445_v58 = vpack.c.b16 %v1142_v9, %v1141_v7  ;;  %v1119_v7 = vrot.slane %v3244_v5, 5 }
  0xd3   : > { %v679_v37 = vpop.f32.mrf.mxu0  ;;  %v1009_v41 = vadd.f32 %v3386_v16, %v990_v32 }
  0xd4   : > { %v796_v42 = vadd.f32 %v795_v62, %v679_v37 }
  0xd5   : > { %v1025_v44 = vpack.c.bf16 %v1009_v41, %v1009_v41  ;;  %2660 = vmatmul.msk.bf16.gmra.mxu3 %vm631_vm4, %v3423_v33  ;;  %v800_v49 = vpop.f32.mrf.mxu1  ;;  %v1114_v41 = vrot.slane %v1112_v21, 4 }
  0xd6   : > { %2633 = vmatmul.msk.bf16.gmra.mxu0 %vm631_vm4, %v3401_v47  ;;  %v891_v46 = vadd.f32 %v857_v10, %v796_v42  ;;  %2651 = vmatmul.msk.bf16.gmra.mxu2 %vm631_vm4, %v3233_v60  ;;  %v1115_v42 = vrot.slane %v3227_v50, 5 }
  0xd7   : > { %1041 = vst.msk [vmem:[%s3397_s15 + $0xc] sm:$0xf] %vm329_vm1, %v1025_v44 }
  0xd8   : > { %v957_v1 = vpop.f32.mrf.mxu3  ;;  %2642 = vmatmul.msk.bf16.gmra.mxu1 %vm631_vm4, %v3203_v18  ;;  %v1116_v51 = vsel %vm3361_vm9, %v1114_v41, %v1115_v42 }
  0xd9   : > { %v991_v24 = vadd.f32 %v957_v1, %v891_v46  ;;  %v862_v62 = vpop.f32.mrf.mxu2 }
  0xdb   : > { %v681_v57 = vpop.f32.mrf.mxu0  ;;  %v1010_v15 = vadd.f32 %v3386_v16, %v991_v24  ;;  %v1144_v24 = vunpack.c.l.b16 %v1116_v51 }
  0xdc   : > { %v798_v6 = vadd.f32 %v797_v23, %v681_v57  ;;  %v403_v23 = vld [vmem:[#allocation2 + $0x3c] sm:$0xe] }
  0xdd   : > { %v1026_v36 = vpack.c.bf16 %v1010_v15, %v1010_v15  ;;  %v802_v10 = vpop.f32.mrf.mxu1  ;;  %v2627_v39 = vrot.slane %v403_v23, 9 }
  0xde   : > { %v892_v11 = vadd.f32 %v859_v40, %v798_v6 }
  0xdf   : > { %1042 = vst.msk [vmem:[%s3397_s15 + $0x10] sm:$0xf] %vm329_vm1, %v1026_v36 }
  0xe0   : > { %v959_v12 = vpop.f32.mrf.mxu3 }
  0xe1   : > { %v992_v26 = vadd.f32 %v959_v12, %v892_v11  ;;  %v864_v19 = vpop.f32.mrf.mxu2 }
  0xe3   : > { %v684_v17 = vpop.f32.mrf.mxu0  ;;  %v1011_v3 = vadd.f32 %v3386_v16, %v992_v26 }
  0xe4   : > { %v801_v31 = vadd.f32 %v800_v49, %v684_v17  ;;  %v1113_v49 = vsel %vm3361_vm9, %v2627_v39, %v1112_v21  ;;  %v1121_v21 = vrot.slane %v1119_v7, 4 }
  0xe5   : > { %v1027_v32 = vpack.c.bf16 %v1011_v3, %v1011_v3  ;;  %2661 = vmatmul.msk.bf16.gmra.mxu3 %vm631_vm4, %v3445_v58  ;;  %v805_v40 = vpop.f32.mrf.mxu1  ;;  %v1143_v1 = vunpack.c.l.b16 %v1113_v49  ;;  %v1122_v3 = vrot.slane %v3262_v20, 5 }
  0xe6   : > { %2634 = vmatmul.msk.bf16.gmra.mxu0 %vm631_vm4, %v3423_v33  ;;  %v893_v37 = vadd.f32 %v862_v62, %v801_v31  ;;  %2652 = vmatmul.msk.bf16.gmra.mxu2 %vm631_vm4, %v3267_v29 }
  0xe7   : > { %1043 = vst.msk [vmem:[%s3397_s15 + $0x14] sm:$0xf] %vm329_vm1, %v1027_v32  ;;  %v3467_v15 = vpack.c.b16 %v1144_v24, %v1143_v1 }
  0xe8   : > { %v962_v30 = vpop.f32.mrf.mxu3  ;;  %2643 = vmatmul.msk.bf16.gmra.mxu1 %vm631_vm4, %v3233_v60 }
  0xe9   : > { %v993_v34 = vadd.f32 %v962_v30, %v893_v37  ;;  %v867_v46 = vpop.f32.mrf.mxu2 }
  0xeb   : > { %v686_v44 = vpop.f32.mrf.mxu0  ;;  %v1012_v50 = vadd.f32 %v3386_v16, %v993_v34 }
  0xec   : > { %v803_v52 = vadd.f32 %v802_v10, %v686_v44  ;;  %v404_v10 = vld [vmem:[#allocation2 + $0x48] sm:$0xe] }
  0xed   : > { %v1028_v55 = vpack.c.bf16 %v1012_v50, %v1012_v50  ;;  %v807_v57 = vpop.f32.mrf.mxu1 }
  0xee   : > { %v894_v62 = vadd.f32 %v864_v19, %v803_v52  ;;  %v2628_v19 = vrot.slane %v404_v10, 9 }
  0xef   : > { %1044 = vst.msk [vmem:[%s3397_s15 + $0x18] sm:$0xf] %vm329_vm1, %v1028_v55  ;;  %v1126_v55 = vrot.slane %v3281_v43, 5 }
  0xf0   : > { %v964_v63 = vpop.f32.mrf.mxu3  ;;  %v1120_v37 = vsel %vm3361_vm9, %v2628_v19, %v1119_v7  ;;  %v1129_v7 = vrot.slane %v3291_v0, 5 }
  0xf1   : > { %v994_v4 = vadd.f32 %v964_v63, %v894_v62  ;;  %v869_v36 = vpop.f32.mrf.mxu2  ;;  %v1145_v42 = vunpack.c.l.b16 %v1120_v37 }
  0xf3   : > { %v689_v6 = vpop.f32.mrf.mxu0  ;;  %v1013_v9 = vadd.f32 %v3386_v16, %v994_v4 }
  0xf4   : > { %v806_v11 = vadd.f32 %v805_v40, %v689_v6  ;;  %v1123_v40 = vsel %vm3361_vm9, %v1121_v21, %v1122_v3 }
  0xf5   : > { %v1029_v12 = vpack.c.bf16 %v1013_v9, %v1013_v9  ;;  %2662 = vmatmul.msk.bf16.gmra.mxu3 %vm631_vm4, %v3467_v15  ;;  %v810_v17 = vpop.f32.mrf.mxu1  ;;  %v1146_v30 = vunpack.c.l.b16 %v1123_v40 }
  0xf6   : > { %2635 = vmatmul.msk.bf16.gmra.mxu0 %vm631_vm4, %v3445_v58  ;;  %v895_v26 = vadd.f32 %v867_v46, %v806_v11  ;;  %2653 = vmatmul.msk.bf16.gmra.mxu2 %vm631_vm4, %v3293_v2 }
  0xf7   : > { %1045 = vst.msk [vmem:[%s3397_s15 + $0x1c] sm:$0xf] %vm329_vm1, %v1029_v12  ;;  %v3489_v51 = vpack.c.b16 %v1146_v30, %v1145_v42  ;;  %v406_v30 = vld [vmem:[#allocation2 + $0x60] sm:$0xe] }
  0xf8   : > { %v967_v5 = vpop.f32.mrf.mxu3  ;;  %2644 = vmatmul.msk.bf16.gmra.mxu1 %vm631_vm4, %v3267_v29 }
  0xf9   : > { %v995_v31 = vadd.f32 %v967_v5, %v895_v26  ;;  %v872_v32 = vpop.f32.mrf.mxu2 }
  0xfb   : > { %v691_v23 = vpop.f32.mrf.mxu0  ;;  %v1014_v20 = vadd.f32 %v3386_v16, %v995_v31 }
  0xfc   : > { %v808_v39 = vadd.f32 %v807_v57, %v691_v23  ;;  %v405_v57 = vld [vmem:[#allocation2 + $0x54] sm:$0xe] }
  0xfd   : > { %v1030_v41 = vpack.c.bf16 %v1014_v20, %v1014_v20  ;;  %v812_v34 = vpop.f32.mrf.mxu1  ;;  %v2629_v6 = vrot.slane %v405_v57, 9 }
  0xfe   : > { %v896_v44 = vadd.f32 %v869_v36, %v808_v39  ;;  %v1128_v36 = vrot.slane %v1126_v55, 4  ;;  %v1359_v39 = vrot.slane %v3304_v13, 5  ;;  %v2756_v13 = vld [vmem:[%s3956_s2 + $0x1c] sm:$0x3] }
  0xff   : > { %1046 = vst.msk [vmem:[%s3397_s15 + $0x20] sm:$0xf] %vm329_vm1, %v1030_v41  ;;  %v1127_v12 = vsel %vm3361_vm9, %v2629_v6, %v1126_v55  ;;  %v2766_v55 = vld [vmem:[%s3956_s2 + $0x1e] sm:$0x3] }
 0x100   : > { %v969_v46 = vpop.f32.mrf.mxu3  ;;  %v1130_v26 = vsel %vm3361_vm9, %v1128_v36, %v1129_v7  ;;  %v1147_v21 = vunpack.c.l.b16 %v1127_v12  ;;  %v2020_v57 = vsel %vm656_vm0, %v2766_v55, 0 }
 0x101   : > { %v996_v49 = vadd.f32 %v969_v46, %v896_v44  ;;  %v874_v52 = vpop.f32.mrf.mxu2  ;;  %v1148_v3 = vunpack.c.l.b16 %v1130_v26  ;;  %2029 = vmatpush.bf16.msrb.mxu3 %v2020_v57 }
 0x103   : > { %v694_v50 = vpop.f32.mrf.mxu0  ;;  %v1015_v1 = vadd.f32 %v3386_v16, %v996_v49  ;;  %v3511_v37 = vpack.c.b16 %v1148_v3, %v1147_v21  ;;  %v2656_v49 = vrot.slane %v406_v30, 9 }
 0x104   : > { %v811_v24 = vadd.f32 %v810_v17, %v694_v50  ;;  %v1361_v50 = vrot.slane %v1359_v39, 4 }
 0x105   : > { %v1031_v62 = vpack.c.bf16 %v1015_v1, %v1015_v1  ;;  %2663 = vmatmul.msk.bf16.gmra.mxu3 %vm631_vm4, %v3489_v51  ;;  %v815_v4 = vpop.f32.mrf.mxu1 }
 0x106   : > { %2636 = vmatmul.msk.bf16.gmra.mxu0 %vm631_vm4, %v3467_v15  ;;  %v897_v63 = vadd.f32 %v872_v32, %v811_v24  ;;  %2654 = vmatmul.msk.bf16.gmra.mxu2 %vm631_vm4, %v3317_v45  ;;  %v1935_v24 = vsel %vm656_vm0, %v2756_v13, 0 }
 0x107   : > { %1047 = vst.msk [vmem:[%s3397_s15 + $0x24] sm:$0xf] %vm329_vm1, %v1031_v62  ;;  %v2738_v62 = vld [vmem:[%s3956_s2 + $0x18] sm:$0x3]  ;;  %1944 = vmatpush.bf16.msrb.mxu2 %v1935_v24 }
 0x108   : > { %v972_v43 = vpop.f32.mrf.mxu3  ;;  %2645 = vmatmul.msk.bf16.gmra.mxu1 %vm631_vm4, %v3293_v2  ;;  %v1881_v6 = vsel %vm656_vm0, %v2738_v62, 0 }
 0x109   : > { %v997_v9 = vadd.f32 %v972_v43, %v897_v63  ;;  %v877_v10 = vpop.f32.mrf.mxu2  ;;  %v1360_v43 = vsel %vm3361_vm9, %v2656_v49, %v1359_v39  ;;  %1890 = vmatpush.bf16.msrb.mxu1 %v1881_v6 }
 0x10a   : > { %v1366_v26 = vunpack.c.l.b16 %v1360_v43  ;;  %v2879_v43 = vld [vmem:[#allocation2 + $0x18] sm:$0xff] }
 0x10b   : > { %v696_v11 = vpop.f32.mrf.mxu0  ;;  %v1016_v0 = vadd.f32 %v3386_v16, %v997_v9 }
 0x10c   : > { %v813_v17 = vadd.f32 %v812_v34, %v696_v11 }
 0x10d   : > { %v1032_v19 = vpack.c.bf16 %v1016_v0, %v1016_v0  ;;  %v817_v5 = vpop.f32.mrf.mxu1 }
 0x10e   : > { %v898_v31 = vadd.f32 %v874_v52, %v813_v17  ;;  %v1362_v52 = vrot.slane %v3314_v38, 5  ;;  %v2739_v38 = vld [vmem:[%s3956_s2 + $0x1a] sm:$0x3] }
 0x10f   : > { %1048 = vst.msk [vmem:[%s3397_s15 + $0x28] sm:$0xf] %vm329_vm1, %v1032_v19 }
 0x110   : > { %v974_v23 = vpop.f32.mrf.mxu3  ;;  %v1363_v9 = vsel %vm3361_vm9, %v1361_v50, %v1362_v52 }
 0x111   : > { %v998_v32 = vadd.f32 %v974_v23, %v898_v31  ;;  %v879_v20 = vpop.f32.mrf.mxu2  ;;  %v1367_v0 = vunpack.c.l.b16 %v1363_v9 }
 0x113   : > { %v699_v40 = vpop.f32.mrf.mxu0  ;;  %v1017_v41 = vadd.f32 %v3386_v16, %v998_v32  ;;  %v3549_v31 = vpack.c.b16 %v1367_v0, %v1366_v26 }
 0x114   : > { %v816_v42 = vadd.f32 %v815_v4, %v699_v40  ;;  %v1829_v4 = vsel %vm656_vm0, %v2739_v38, 0 }
 0x115   : > { %v1033_v34 = vpack.c.bf16 %v1017_v41, %v1017_v41  ;;  %2664 = vmatmul.msk.bf16.gmra.mxu3 %vm631_vm4, %v3511_v37  ;;  %v820_v46 = vpop.f32.mrf.mxu1  ;;  %1838 = vmatpush.bf16.msrb.mxu0 %v1829_v4 }
 0x116   : > { %2637 = vmatmul.msk.bf16.gmra.mxu0 %vm631_vm4, %v3489_v51  ;;  %v899_v44 = vadd.f32 %v877_v10, %v816_v42  ;;  %2655 = vmatmul.msk.bf16.gmra.mxu2 %vm631_vm4, %v3349_v14 }
 0x117   : > { %1049 = vst.msk [vmem:[%s3397_s15 + $0x2c] sm:$0xf] %vm329_vm1, %v1033_v34  ;;  %v2878_v34 = vld [vmem:[#allocation2 + $0xc] sm:$0xff] }
 0x118   : > { %v977_v1 = vpop.f32.mrf.mxu3  ;;  %2646 = vmatmul.msk.bf16.gmra.mxu1 %vm631_vm4, %v3317_v45 }
 0x119   : > { %v999_v63 = vadd.f32 %v977_v1, %v899_v44  ;;  %v882_v7 = vpop.f32.mrf.mxu2 }
 0x11b   : > { %v701_v36 = vpop.f32.mrf.mxu0  ;;  %v1018_v11 = vadd.f32 %v3386_v16, %v999_v63 }
 0x11c   : > { %v818_v10 = vadd.f32 %v817_v5, %v701_v36 }
 0x11d   : > { %v1034_v12 = vpack.c.bf16 %v1018_v11, %v1018_v11  ;;  %v822_v17 = vpop.f32.mrf.mxu1 }
 0x11e   : > { %v900_v19 = vadd.f32 %v879_v20, %v818_v10 }
 0x11f   : > { %1050 = vst.msk [vmem:[%s3397_s15 + $0x30] sm:$0xf] %vm329_vm1, %v1034_v12 }
 0x120   : > { %v979_v21 = vpop.f32.mrf.mxu3 }
 0x121   : > { %v1000_v3 = vadd.f32 %v979_v21, %v900_v19  ;;  %v884_v32 = vpop.f32.mrf.mxu2 }
 0x123   : > { %v704_v23 = vpop.f32.mrf.mxu0  ;;  %v1019_v40 = vadd.f32 %v3386_v16, %v1000_v3 }
 0x124   : > { %v821_v39 = vadd.f32 %v820_v46, %v704_v23 }
 0x125   : > { %v1035_v41 = vpack.c.bf16 %v1019_v40, %v1019_v40  ;;  %2665 = vmatmul.msk.bf16.gmra.mxu3 %vm631_vm4, %v3549_v31  ;;  %v1245_v42 = vpop.f32.mrf.mxu1 }
 0x126   : > { %2638 = vmatmul.msk.bf16.gmra.mxu0 %vm631_vm4, %v3511_v37  ;;  %v901_v5 = vadd.f32 %v882_v7, %v821_v39  ;;  %2705 = vmatmul.msk.bf16.vlgmr.msra.gmra.mxu2 %vm631_vm4, %v3149_v28 }
 0x127   : > { %1051 = vst.msk [vmem:[%s3397_s15 + $0x34] sm:$0xf] %vm329_vm1, %v1035_v41 }
 0x128   : > { %v982_v20 = vpop.f32.mrf.mxu3  ;;  %2692 = vmatmul.msk.bf16.vlgmr.msra.gmra.mxu1 %vm631_vm4, %v2878_v34 }
 0x129   : > { %v1001_v30 = vadd.f32 %v982_v20, %v901_v5  ;;  %v1299_v46 = vpop.f32.mrf.mxu2  ;;  %v2880_v20 = vld [vmem:[#allocation2 + $0x24] sm:$0xff] }
 0x12b   : > { %v706_v44 = vpop.f32.mrf.mxu0  ;;  %v1020_v49 = vadd.f32 %v3386_v16, %v1001_v30 }
 0x12c   : > { %v823_v50 = vadd.f32 %v822_v17, %v706_v44 }
 0x12d   : > { %v1036_v52 = vpack.c.bf16 %v1020_v49, %v1020_v49  ;;  %v1247_v13 = vpop.f32.mrf.mxu1 }
 0x12e   : > { %v902_v55 = vadd.f32 %v884_v32, %v823_v50 }
 0x12f   : > { %1052 = vst.msk [vmem:[%s3397_s15 + $0x38] sm:$0xf] %vm329_vm1, %v1036_v52 }
 0x130   : > { %v984_v1 = vpop.f32.mrf.mxu3 }
 0x131   : > { %v1002_v24 = vadd.f32 %v984_v1, %v902_v55  ;;  %v1301_v28 = vpop.f32.mrf.mxu2 }
 0x133   : > { %v1193_v57 = vpop.f32.mrf.mxu0  ;;  %v1021_v38 = vadd.f32 %v3386_v16, %v1002_v24 }
 0x134   : > { %v1246_v62 = vadd.f32 %v1245_v42, %v1193_v57 }
 0x135   : > { %v1037_v63 = vpack.c.bf16 %v1021_v38, %v1021_v38  ;;  %2714 = vmatmul.msk.bf16.vlgmr.msra.gmra.mxu3 %vm631_vm4, %v3174_v53  ;;  %v1250_v6 = vpop.f32.mrf.mxu1 }
 0x136   : > { %2684 = vmatmul.msk.bf16.vlgmr.msra.gmra.mxu0 %vm631_vm4, %v3147_v25  ;;  %v1339_v4 = vadd.f32 %v1299_v46, %v1246_v62  ;;  %2706 = vmatmul.msk.bf16.gmra.mxu2 %vm631_vm4, %v3178_v59 }
 0x137   : > { %1053 = vst.msk [vmem:[%s3397_s15 + $0x3c] sm:$0xf] %vm329_vm1, %v1037_v63 }
 0x138   : > { %v1384_v36 = vpop.f32.mrf.mxu3  ;;  %2693 = vmatmul.msk.bf16.gmra.mxu1 %vm631_vm4, %v2879_v43 }
 0x139   : > { %v1424_v7 = vadd.f32 %v1384_v36, %v1339_v4  ;;  %v1304_v11 = vpop.f32.mrf.mxu2 }
 0x13b   : > { %v1195_v9 = vpop.f32.mrf.mxu0  ;;  %v1440_v10 = vadd.f32 %v3386_v16, %v1424_v7 }
 0x13c   : > { %v1248_v12 = vadd.f32 %v1247_v13, %v1195_v9 }
 0x13d   : > { %v1456_v26 = vpack.c.bf16 %v1440_v10, %v1440_v10  ;;  %v1252_v0 = vpop.f32.mrf.mxu1 }
 0x13e   : > { %v1340_v17 = vadd.f32 %v1301_v28, %v1248_v12 }
 0x13f   : > { %2666 = vst.msk [vmem:[%s3397_s15 + $0x40] sm:$0xf] %vm329_vm1, %v1456_v26 }
 0x140   : > { %v1386_v19 = vpop.f32.mrf.mxu3 }
 0x141   : > { %v1425_v21 = vadd.f32 %v1386_v19, %v1340_v17  ;;  %v1306_v59 = vpop.f32.mrf.mxu2 }
 0x143   : > { %v1198_v3 = vpop.f32.mrf.mxu0  ;;  %v1441_v23 = vadd.f32 %v3386_v16, %v1425_v21 }
 0x144   : > { %v1251_v32 = vadd.f32 %v1250_v6, %v1198_v3  ;;  %v2881_v6 = vld [vmem:[#allocation2 + $0x30] sm:$0xff] }
 0x145   : > { %v1457_v40 = vpack.c.bf16 %v1441_v23, %v1441_v23  ;;  %2715 = vmatmul.msk.bf16.gmra.mxu3 %vm631_vm4, %v3203_v18  ;;  %v1255_v41 = vpop.f32.mrf.mxu1 }
 0x146   : > { %2685 = vmatmul.msk.bf16.gmra.mxu0 %vm631_vm4, %v3174_v53  ;;  %v1341_v39 = vadd.f32 %v1304_v11, %v1251_v32  ;;  %2707 = vmatmul.msk.bf16.gmra.mxu2 %vm631_vm4, %v3207_v22 }
 0x147   : > { %2667 = vst.msk [vmem:[%s3397_s15 + $0x44] sm:$0xf] %vm329_vm1, %v1457_v40 }
 0x148   : > { %v1389_v5 = vpop.f32.mrf.mxu3  ;;  %2694 = vmatmul.msk.bf16.gmra.mxu1 %vm631_vm4, %v2880_v20 }
 0x149   : > { %v1426_v42 = vadd.f32 %v1389_v5, %v1341_v39  ;;  %v1309_v34 = vpop.f32.mrf.mxu2 }
 0x14b   : > { %v1200_v30 = vpop.f32.mrf.mxu0  ;;  %v1442_v44 = vadd.f32 %v3386_v16, %v1426_v42 }
 0x14c   : > { %v1253_v46 = vadd.f32 %v1252_v0, %v1200_v30 }
 0x14d   : > { %v1458_v49 = vpack.c.bf16 %v1442_v44, %v1442_v44  ;;  %v1257_v50 = vpop.f32.mrf.mxu1 }
 0x14e   : > { %v1342_v52 = vadd.f32 %v1306_v59, %v1253_v46  ;;  %v358_v46 = vld [vmem:[%s3260_s8 + $0xc] sm:$0xf] }
 0x14f   : > { %2668 = vst.msk [vmem:[%s3397_s15 + $0x48] sm:$0xf] %vm329_vm1, %v1458_v49  ;;  %v359_v49 = vld [vmem:[%s3260_s8 + $0x10] sm:$0xf] }
 0x150   : > { %v1391_v13 = vpop.f32.mrf.mxu3  ;;  %365 = vst.msk [vmem:[#allocation2 + $0x6c] sm:$0xf] %vm329_vm1, %v358_v46 }
 0x151   : > { %v1427_v55 = vadd.f32 %v1391_v13, %v1342_v52  ;;  %v1311_v22 = vpop.f32.mrf.mxu2  ;;  %366 = vst.msk [vmem:[#allocation2 + $0x70] sm:$0xf] %vm329_vm1, %v359_v49 }
 0x153   : > { %v1203_v1 = vpop.f32.mrf.mxu0  ;;  %v1443_v24 = vadd.f32 %v3386_v16, %v1427_v55 }
 0x154   : > { %v1256_v57 = vadd.f32 %v1255_v41, %v1203_v1 }
 0x155   : > { %v1459_v28 = vpack.c.bf16 %v1443_v24, %v1443_v24  ;;  %2716 = vmatmul.msk.bf16.gmra.mxu3 %vm631_vm4, %v3233_v60  ;;  %v1260_v62 = vpop.f32.mrf.mxu1 }
 0x156   : > { %2686 = vmatmul.msk.bf16.gmra.mxu0 %vm631_vm4, %v3203_v18  ;;  %v1343_v38 = vadd.f32 %v1309_v34, %v1256_v57  ;;  %2708 = vmatmul.msk.bf16.gmra.mxu2 %vm631_vm4, %v3236_v61 }
 0x157   : > { %2669 = vst.msk [vmem:[%s3397_s15 + $0x4c] sm:$0xf] %vm329_vm1, %v1459_v28 }
 0x158   : > { %v1394_v63 = vpop.f32.mrf.mxu3  ;;  %2695 = vmatmul.msk.bf16.gmra.mxu1 %vm631_vm4, %v2881_v6 }
 0x159   : > { %v1428_v4 = vadd.f32 %v1394_v63, %v1343_v38  ;;  %v1314_v7 = vpop.f32.mrf.mxu2 }
 0x15b   : > { %v1205_v36 = vpop.f32.mrf.mxu0  ;;  %v1444_v43 = vadd.f32 %v3386_v16, %v1428_v4 }
 0x15c   : > { %v1258_v9 = vadd.f32 %v1257_v50, %v1205_v36 }
 0x15d   : > { %v1460_v11 = vpack.c.bf16 %v1444_v43, %v1444_v43  ;;  %v1262_v10 = vpop.f32.mrf.mxu1 }
 0x15e   : > { %v1344_v12 = vadd.f32 %v1311_v22, %v1258_v9  ;;  %v360_v22 = vld [vmem:[%s3260_s8 + $0x14] sm:$0x1] }
 0x15f   : > { %2670 = vst.msk [vmem:[%s3397_s15 + $0x50] sm:$0xf] %vm329_vm1, %v1460_v11 }
 0x160   : > { %v1396_v26 = vpop.f32.mrf.mxu3  ;;  %367 = vst.msk [vmem:[#allocation2 + $0x74] sm:$0x1] %vm332_vm2, %v360_v22 }
 0x161   : > { %v1429_v0 = vadd.f32 %v1396_v26, %v1344_v12  ;;  %v1316_v19 = vpop.f32.mrf.mxu2 }
 0x163   : > { %v1208_v17 = vpop.f32.mrf.mxu0  ;;  %v1445_v21 = vadd.f32 %v3386_v16, %v1429_v0 }
 0x164   : > { %v1261_v3 = vadd.f32 %v1260_v62, %v1208_v17 }
 0x165   : > { %v1461_v59 = vpack.c.bf16 %v1445_v21, %v1445_v21  ;;  %2717 = vmatmul.msk.bf16.gmra.mxu3 %vm631_vm4, %v3267_v29  ;;  %v1265_v32 = vpop.f32.mrf.mxu1 }
 0x166   : > { %2687 = vmatmul.msk.bf16.gmra.mxu0 %vm631_vm4, %v3233_v60  ;;  %v1345_v23 = vadd.f32 %v1314_v7, %v1261_v3  ;;  %2709 = vmatmul.msk.bf16.gmra.mxu2 %vm631_vm4, %v3271_v35  ;;  %v386_v3 = vld [vmem:[#allocation2 + $0x6c] sm:$0xf] }
 0x167   : > { %2671 = vst.msk [vmem:[%s3397_s15 + $0x54] sm:$0xf] %vm329_vm1, %v1461_v59  ;;  %v3646_v59 = vld [vmem:[#allocation2 + $0x70] sm:$0xf] }
 0x168   : > { %v1399_v40 = vpop.f32.mrf.mxu3  ;;  %2696 = vmatmul.msk.bf16.gmra.mxu1 %vm631_vm4, %v3236_v61 }
 0x169   : > { %v1430_v39 = vadd.f32 %v1399_v40, %v1345_v23  ;;  %v1319_v5 = vpop.f32.mrf.mxu2 }
 0x16b   : > { %v1210_v41 = vpop.f32.mrf.mxu0  ;;  %v1446_v42 = vadd.f32 %v3386_v16, %v1430_v39 }
 0x16c   : > { %v1263_v20 = vadd.f32 %v1262_v10, %v1210_v41  ;;  %v1676_v41 = vshrl.u32 %v386_v3, 16 }
 0x16d   : > { %v1462_v30 = vpack.c.bf16 %v1446_v42, %v1446_v42  ;;  %v1267_v34 = vpop.f32.mrf.mxu1  ;;  %v1685_v42 = vshll.u32 %v3646_v59, 16 }
 0x16e   : > { %v1346_v44 = vadd.f32 %v1316_v19, %v1263_v20  ;;  %v1689_v20 = vshrl.u32 %v3646_v59, 16  ;;  %v1678_v49 = vrot.slane %v1676_v41, 4 }
 0x16f   : > { %2672 = vst.msk [vmem:[%s3397_s15 + $0x58] sm:$0xf] %vm329_vm1, %v1462_v30 }
 0x170   : > { %v1401_v50 = vpop.f32.mrf.mxu3 }
 0x171   : > { %v1431_v52 = vadd.f32 %v1401_v50, %v1346_v44  ;;  %v1321_v13 = vpop.f32.mrf.mxu2 }
 0x173   : > { %v1213_v61 = vpop.f32.mrf.mxu0  ;;  %v1447_v55 = vadd.f32 %v3386_v16, %v1431_v52  ;;  %v1687_v52 = vrot.slane %v1685_v42, 5 }
 0x174   : > { %v1266_v1 = vadd.f32 %v1265_v32, %v1213_v61  ;;  %v1691_v61 = vrot.slane %v1689_v20, 4 }
 0x175   : > { %v1463_v24 = vpack.c.bf16 %v1447_v55, %v1447_v55  ;;  %2718 = vmatmul.msk.bf16.gmra.mxu3 %vm631_vm4, %v3293_v2  ;;  %v1270_v28 = vpop.f32.mrf.mxu1 }
 0x176   : > { %2688 = vmatmul.msk.bf16.gmra.mxu0 %vm631_vm4, %v3267_v29  ;;  %v1347_v57 = vadd.f32 %v1319_v5, %v1266_v1  ;;  %2710 = vmatmul.msk.bf16.gmra.mxu2 %vm631_vm4, %v3296_v8  ;;  %v1679_v5 = vshll.u32 %v386_v3, 16 }
 0x177   : > { %2673 = vst.msk [vmem:[%s3397_s15 + $0x5c] sm:$0xf] %vm329_vm1, %v1463_v24 }
 0x178   : > { %v1404_v38 = vpop.f32.mrf.mxu3  ;;  %2697 = vmatmul.msk.bf16.gmra.mxu1 %vm631_vm4, %v3271_v35  ;;  %v1681_v50 = vrot.slane %v1679_v5, 5 }
 0x179   : > { %v1432_v62 = vadd.f32 %v1404_v38, %v1347_v57  ;;  %v1324_v4 = vpop.f32.mrf.mxu2 }
 0x17a   : > { %v1682_v57 = vor.u32 %v1681_v50, %v1678_v49 }
 0x17b   : > { %v1215_v63 = vpop.f32.mrf.mxu0  ;;  %v1448_v6 = vadd.f32 %v3386_v16, %v1432_v62 }
 0x17c   : > { %v1268_v36 = vadd.f32 %v1267_v34, %v1215_v63 }
 0x17d   : > { %v1464_v7 = vpack.c.bf16 %v1448_v6, %v1448_v6  ;;  %v1272_v43 = vpop.f32.mrf.mxu1 }
 0x17e   : > { %v1348_v9 = vadd.f32 %v1321_v13, %v1268_v36  ;;  %v3655_v13 = vld [vmem:[#allocation2 + $0x74] sm:$0x1] }
 0x17f   : > { %2674 = vst.msk [vmem:[%s3397_s15 + $0x60] sm:$0xf] %vm329_vm1, %v1464_v7  ;;  %v1695_v38 = vshll.u32 %v3655_v13, 16 }
 0x180   : > { %v1406_v11 = vpop.f32.mrf.mxu3 }
 0x181   : > { %v1433_v10 = vadd.f32 %v1406_v11, %v1348_v9  ;;  %v1326_v26 = vpop.f32.mrf.mxu2  ;;  %v1697_v11 = vrot.slane %v1695_v38, 5 }
 0x183   : > { %v1218_v12 = vpop.f32.mrf.mxu0  ;;  %v1449_v0 = vadd.f32 %v3386_v16, %v1433_v10 }
 0x184   : > { %v1271_v17 = vadd.f32 %v1270_v28, %v1218_v12  ;;  %v1692_v28 = vor.u32 %v1691_v61, %v1687_v52 }
 0x185   : > { %v1465_v19 = vpack.c.bf16 %v1449_v0, %v1449_v0  ;;  %2719 = vmatmul.msk.bf16.gmra.mxu3 %vm631_vm4, %v3317_v45  ;;  %v1275_v21 = vpop.f32.mrf.mxu1 }
 0x186   : > { %2689 = vmatmul.msk.bf16.gmra.mxu0 %vm631_vm4, %v3293_v2  ;;  %v1349_v35 = vadd.f32 %v1324_v4, %v1271_v17  ;;  %2711 = vmatmul.msk.bf16.gmra.mxu2 %vm631_vm4, %v3319_v48  ;;  %v2814_v4 = vld [vmem:[#allocation2 + $0x6c] sm:$0xff]  ;;  %v1693_v9 = vrot.slane %v1692_v28, 4 }
 0x187   : > { %2675 = vst.msk [vmem:[%s3397_s15 + $0x64] sm:$0xf] %vm329_vm1, %v1465_v19 }
 0x188   : > { %v1409_v23 = vpop.f32.mrf.mxu3  ;;  %2698 = vmatmul.msk.bf16.gmra.mxu1 %vm631_vm4, %v3296_v8  ;;  %v1698_v19 = vsel %vm3117_vm6, %v1693_v9, %v1697_v11 }
 0x189   : > { %v1434_v32 = vadd.f32 %v1409_v23, %v1349_v35  ;;  %v1329_v39 = vpop.f32.mrf.mxu2 }
 0x18b   : > { %v1220_v40 = vpop.f32.mrf.mxu0  ;;  %v1450_v30 = vadd.f32 %v3386_v16, %v1434_v32  ;;  %v1702_v32 = vunpack.c.l.b16 %v1698_v19 }
 0x18c   : > { %v1273_v34 = vadd.f32 %v1272_v43, %v1220_v40  ;;  %v1683_v43 = vrot.slane %v1682_v57, 4 }
 0x18d   : > { %v1466_v44 = vpack.c.bf16 %v1450_v30, %v1450_v30  ;;  %v1277_v46 = vpop.f32.mrf.mxu1 }
 0x18e   : > { %v1350_v8 = vadd.f32 %v1326_v26, %v1273_v34  ;;  %v1688_v17 = vsel %vm3117_vm6, %v1683_v43, %v1687_v52 }
 0x18f   : > { %2676 = vst.msk [vmem:[%s3397_s15 + $0x68] sm:$0xf] %vm329_vm1, %v1466_v44  ;;  %v1701_v23 = vunpack.c.l.b16 %v1688_v17 }
 0x190   : > { %v1411_v55 = vpop.f32.mrf.mxu3 }
 0x191   : > { %v1435_v1 = vadd.f32 %v1411_v55, %v1350_v8  ;;  %v1331_v24 = vpop.f32.mrf.mxu2  ;;  %v3675_v5 = vpack.c.b16 %v1702_v32, %v1701_v23 }
 0x193   : > { %v1223_v22 = vpop.f32.mrf.mxu0  ;;  %v1451_v62 = vadd.f32 %v3386_v16, %v1435_v1 }
 0x194   : > { %v1276_v63 = vadd.f32 %v1275_v21, %v1223_v22 }
 0x195   : > { %v1467_v6 = vpack.c.bf16 %v1451_v62, %v1451_v62  ;;  %2720 = vmatmul.msk.bf16.gmra.mxu3 %vm631_vm4, %v3349_v14  ;;  %v1280_v7 = vpop.f32.mrf.mxu1 }
 0x196   : > { %2690 = vmatmul.msk.bf16.gmra.mxu0 %vm631_vm4, %v3317_v45  ;;  %v1351_v36 = vadd.f32 %v1329_v39, %v1276_v63  ;;  %2712 = vmatmul.msk.bf16.gmra.mxu2 %vm631_vm4, %v2814_v4 }
 0x197   : > { %2677 = vst.msk [vmem:[%s3397_s15 + $0x6c] sm:$0xf] %vm329_vm1, %v1467_v6 }
 0x198   : > { %v1414_v10 = vpop.f32.mrf.mxu3  ;;  %2699 = vmatmul.msk.bf16.gmra.mxu1 %vm631_vm4, %v3319_v48 }
 0x199   : > { %v1436_v12 = vadd.f32 %v1414_v10, %v1351_v36  ;;  %v1334_v0 = vpop.f32.mrf.mxu2 }
 0x19b   : > { %v1225_v26 = vpop.f32.mrf.mxu0  ;;  %v1452_v35 = vadd.f32 %v3386_v16, %v1436_v12 }
 0x19c   : > { %v1278_v21 = vadd.f32 %v1277_v46, %v1225_v26 }
 0x19d   : > { %v1468_v3 = vpack.c.bf16 %v1452_v35, %v1452_v35  ;;  %v1282_v40 = vpop.f32.mrf.mxu1 }
 0x19e   : > { %v1352_v39 = vadd.f32 %v1331_v24, %v1278_v21 }
 0x19f   : > { %2678 = vst.msk [vmem:[%s3397_s15 + $0x70] sm:$0xf] %vm329_vm1, %v1468_v3 }
 0x1a0   : > { %v1416_v48 = vpop.f32.mrf.mxu3 }
 0x1a1   : > { %v1437_v41 = vadd.f32 %v1416_v48, %v1352_v39  ;;  %v1336_v20 = vpop.f32.mrf.mxu2 }
 0x1a3   : > { %v1228_v42 = vpop.f32.mrf.mxu0  ;;  %v1453_v54 = vadd.f32 %v3386_v16, %v1437_v41 }
 0x1a4   : > { %v1281_v30 = vadd.f32 %v1280_v7, %v1228_v42 }
 0x1a5   : > { %v1469_v34 = vpack.c.bf16 %v1453_v54, %v1453_v54  ;;  %2721 = vmatmul.msk.bf16.gmra.mxu3 %vm631_vm4, %v3675_v5  ;;  %v1557_v46 = vpop.f32.mrf.mxu1 }
 0x1a6   : > { %2691 = vmatmul.msk.bf16.gmra.mxu0 %vm631_vm4, %v3349_v14  ;;  %v1353_v44 = vadd.f32 %v1334_v0, %v1281_v30  ;;  %2757 = vmatmul.msk.bf16.vlgmr.msrb.gmra.mxu2 %vm631_vm4, %v3174_v53 }
 0x1a7   : > { %2679 = vst.msk [vmem:[%s3397_s15 + $0x74] sm:$0xf] %vm329_vm1, %v1469_v34 }
 0x1a8   : > { %v1419_v49 = vpop.f32.mrf.mxu3  ;;  %2748 = vmatmul.msk.bf16.vlgmr.msrb.gmra.mxu1 %vm631_vm4, %v3147_v25 }
 0x1a9   : > { %v1438_v50 = vadd.f32 %v1419_v49, %v1353_v44  ;;  %v1619_v61 = vpop.f32.mrf.mxu2 }
 0x1ab   : > { %v1230_v52 = vpop.f32.mrf.mxu0  ;;  %v1454_v8 = vadd.f32 %v3386_v16, %v1438_v50 }
 0x1ac   : > { %v1283_v55 = vadd.f32 %v1282_v40, %v1230_v52 }
 0x1ad   : > { %v1470_v1 = vpack.c.bf16 %v1454_v8, %v1454_v8  ;;  %v1559_v22 = vpop.f32.mrf.mxu1 }
 0x1ae   : > { %v1354_v24 = vadd.f32 %v1336_v20, %v1283_v55 }
 0x1af   : > { %2680 = vst.msk [vmem:[%s3397_s15 + $0x78] sm:$0xf] %vm329_vm1, %v1470_v1 }
 0x1b0   : > { %v1421_v57 = vpop.f32.mrf.mxu3 }
 0x1b1   : > { %v1439_v28 = vadd.f32 %v1421_v57, %v1354_v24  ;;  %v1621_v62 = vpop.f32.mrf.mxu2 }
 0x1b3   : > { %v1505_v38 = vpop.f32.mrf.mxu0  ;;  %v1455_v63 = vadd.f32 %v3386_v16, %v1439_v28 }
 0x1b4   : > { %v1558_v4 = vadd.f32 %v1557_v46, %v1505_v38 }
 0x1b5   : > { %v1471_v6 = vpack.c.bf16 %v1455_v63, %v1455_v63  ;;  %2767 = vmatmul.msk.bf16.vlgmr.msrb.gmra.mxu3 %vm631_vm4, %v3401_v47  ;;  %v1562_v36 = vpop.f32.mrf.mxu1 }
 0x1b6   : > { %2740 = vmatmul.msk.bf16.vlgmr.msrb.gmra.mxu0 %vm631_vm4, %v3375_v56  ;;  %v1659_v25 = vadd.f32 %v1619_v61, %v1558_v4  ;;  %2758 = vmatmul.msk.bf16.gmra.mxu2 %vm631_vm4, %v3203_v18 }
 0x1b7   : > { %2681 = vst.msk [vmem:[%s3397_s15 + $0x7c] sm:$0xf] %vm329_vm1, %v1471_v6 }
 0x1b8   : > { %v1719_v7 = vpop.f32.mrf.mxu3  ;;  %2749 = vmatmul.msk.bf16.gmra.mxu1 %vm631_vm4, %v3174_v53 }
 0x1b9   : > { %v1759_v43 = vadd.f32 %v1719_v7, %v1659_v25  ;;  %v1624_v11 = vpop.f32.mrf.mxu2 }
 0x1bb   : > { %v1507_v9 = vpop.f32.mrf.mxu0  ;;  %v1775_v10 = vadd.f32 %v3386_v16, %v1759_v43 }
 0x1bc   : > { %v1560_v56 = vadd.f32 %v1559_v22, %v1507_v9 }
 0x1bd   : > { %v1791_v12 = vpack.c.bf16 %v1775_v10, %v1775_v10  ;;  %v1564_v26 = vpop.f32.mrf.mxu1 }
 0x1be   : > { %v1660_v0 = vadd.f32 %v1621_v62, %v1560_v56 }
 0x1bf   : > { %2722 = vst.msk [vmem:[%s3397_s15 + $0x80] sm:$0xf] %vm329_vm1, %v1791_v12 }
 0x1c0   : > { %v1721_v17 = vpop.f32.mrf.mxu3 }
 0x1c1   : > { %v1760_v19 = vadd.f32 %v1721_v17, %v1660_v0  ;;  %v1626_v21 = vpop.f32.mrf.mxu2 }
 0x1c3   : > { %v1510_v35 = vpop.f32.mrf.mxu0  ;;  %v1776_v3 = vadd.f32 %v3386_v16, %v1760_v19 }
 0x1c4   : > { %v1563_v23 = vadd.f32 %v1562_v36, %v1510_v35 }
 0x1c5   : > { %v1792_v32 = vpack.c.bf16 %v1776_v3, %v1776_v3  ;;  %2768 = vmatmul.msk.bf16.gmra.mxu3 %vm631_vm4, %v3423_v33  ;;  %v1567_v40 = vpop.f32.mrf.mxu1 }
 0x1c6   : > { %2741 = vmatmul.msk.bf16.gmra.mxu0 %vm631_vm4, %v3401_v47  ;;  %v1661_v53 = vadd.f32 %v1624_v11, %v1563_v23  ;;  %2759 = vmatmul.msk.bf16.gmra.mxu2 %vm631_vm4, %v3233_v60  ;;  %v3719_v47 = vld [vmem:[%s3957_s3] ss:$0 sm:$0xff] }
 0x1c7   : > { %2723 = vst.msk [vmem:[%s3397_s15 + $0x84] sm:$0xf] %vm329_vm1, %v1792_v32 }
 0x1c8   : > { %v1724_v39 = vpop.f32.mrf.mxu3  ;;  %2750 = vmatmul.msk.bf16.gmra.mxu1 %vm631_vm4, %v3203_v18 }
 0x1c9   : > { %v1761_v48 = vadd.f32 %v1724_v39, %v1661_v53  ;;  %v1629_v41 = vpop.f32.mrf.mxu2 }
 0x1cb   : > { %v1512_v16 = vpop.f32.mrf.mxu0  ;;  %v1777_v42 = vadd.f32 %v3719_v47, %v1761_v48 }
 0x1cc   : > { %v1565_v20 = vadd.f32 %v1564_v26, %v1512_v16 }
 0x1cd   : > { %v1793_v54 = vpack.c.bf16 %v1777_v42, %v1777_v42  ;;  %v1569_v30 = vpop.f32.mrf.mxu1 }
 0x1ce   : > { %v1662_v34 = vadd.f32 %v1626_v21, %v1565_v20 }
 0x1cf   : > { %2724 = vst.msk [vmem:[%s3397_s15 + $0x88] sm:$0xf] %vm329_vm1, %v1793_v54 }
 0x1d0   : > { %v1726_v44 = vpop.f32.mrf.mxu3 }
 0x1d1   : > { %v1762_v46 = vadd.f32 %v1726_v44, %v1662_v34  ;;  %v1631_v18 = vpop.f32.mrf.mxu2 }
 0x1d3   : > { %v1515_v49 = vpop.f32.mrf.mxu0  ;;  %v1778_v50 = vadd.f32 %v3719_v47, %v1762_v46 }
 0x1d4   : > { %v1568_v52 = vadd.f32 %v1567_v40, %v1515_v49 }
 0x1d5   : > { %v1794_v61 = vpack.c.bf16 %v1778_v50, %v1778_v50  ;;  %2769 = vmatmul.msk.bf16.gmra.mxu3 %vm631_vm4, %v3445_v58  ;;  %v1572_v55 = vpop.f32.mrf.mxu1 }
 0x1d6   : > { %2742 = vmatmul.msk.bf16.gmra.mxu0 %vm631_vm4, %v3423_v33  ;;  %v1663_v8 = vadd.f32 %v1629_v41, %v1568_v52  ;;  %2760 = vmatmul.msk.bf16.gmra.mxu2 %vm631_vm4, %v3267_v29 }
 0x1d7   : > { %2725 = vst.msk [vmem:[%s3397_s15 + $0x8c] sm:$0xf] %vm329_vm1, %v1794_v61 }
 0x1d8   : > { %v1729_v1 = vpop.f32.mrf.mxu3  ;;  %2751 = vmatmul.msk.bf16.gmra.mxu1 %vm631_vm4, %v3233_v60 }
 0x1d9   : > { %v1763_v22 = vadd.f32 %v1729_v1, %v1663_v8  ;;  %v1634_v57 = vpop.f32.mrf.mxu2 }
 0x1db   : > { %v1517_v24 = vpop.f32.mrf.mxu0  ;;  %v1779_v28 = vadd.f32 %v3719_v47, %v1763_v22 }
 0x1dc   : > { %v1570_v33 = vadd.f32 %v1569_v30, %v1517_v24 }
 0x1dd   : > { %v1795_v38 = vpack.c.bf16 %v1779_v28, %v1779_v28  ;;  %v1574_v62 = vpop.f32.mrf.mxu1 }
 0x1de   : > { %v1664_v63 = vadd.f32 %v1631_v18, %v1570_v33 }
 0x1df   : > { %2726 = vst.msk [vmem:[%s3397_s15 + $0x90] sm:$0xf] %vm329_vm1, %v1795_v38 }
 0x1e0   : > { %v1731_v4 = vpop.f32.mrf.mxu3 }
 0x1e1   : > { %v1764_v6 = vadd.f32 %v1731_v4, %v1664_v63  ;;  %v1636_v36 = vpop.f32.mrf.mxu2 }
 0x1e3   : > { %v1520_v25 = vpop.f32.mrf.mxu0  ;;  %v1780_v7 = vadd.f32 %v3719_v47, %v1764_v6 }
 0x1e4   : > { %v1573_v43 = vadd.f32 %v1572_v55, %v1520_v25 }
 0x1e5   : > { %v1796_v9 = vpack.c.bf16 %v1780_v7, %v1780_v7  ;;  %2770 = vmatmul.msk.bf16.gmra.mxu3 %vm631_vm4, %v3467_v15  ;;  %v1577_v11 = vpop.f32.mrf.mxu1 }
 0x1e6   : > { %2743 = vmatmul.msk.bf16.gmra.mxu0 %vm631_vm4, %v3445_v58  ;;  %v1665_v60 = vadd.f32 %v1634_v57, %v1573_v43  ;;  %2761 = vmatmul.msk.bf16.gmra.mxu2 %vm631_vm4, %v3293_v2  ;;  %v407_v43 = vld [vmem:[#allocation2 + $0x6c] sm:$0xe] }
 0x1e7   : > { %2727 = vst.msk [vmem:[%s3397_s15 + $0x94] sm:$0xf] %vm329_vm1, %v1796_v9 }
 0x1e8   : > { %v1734_v10 = vpop.f32.mrf.mxu3  ;;  %2752 = vmatmul.msk.bf16.gmra.mxu1 %vm631_vm4, %v3267_v29 }
 0x1e9   : > { %v1765_v56 = vadd.f32 %v1734_v10, %v1665_v60  ;;  %v1639_v26 = vpop.f32.mrf.mxu2  ;;  %v2765_v10 = vrot.slane %v407_v43, 9 }
 0x1eb   : > { %v1522_v12 = vpop.f32.mrf.mxu0  ;;  %v1781_v0 = vadd.f32 %v3719_v47, %v1765_v56 }
 0x1ec   : > { %v1575_v58 = vadd.f32 %v1574_v62, %v1522_v12  ;;  %v2009_v12 = vrot.slane %v3655_v13, 5 }
 0x1ed   : > { %v1797_v17 = vpack.c.bf16 %v1781_v0, %v1781_v0  ;;  %v1579_v19 = vpop.f32.mrf.mxu1 }
 0x1ee   : > { %v1666_v35 = vadd.f32 %v1636_v36, %v1575_v58  ;;  %v2006_v36 = vrot.slane %v3646_v59, 5 }
 0x1ef   : > { %2728 = vst.msk [vmem:[%s3397_s15 + $0x98] sm:$0xf] %vm329_vm1, %v1797_v17 }
 0x1f0   : > { %v1736_v21 = vpop.f32.mrf.mxu3  ;;  %v2008_v56 = vrot.slane %v2006_v36, 4  ;;  %v2007_v58 = vsel %vm3361_vm9, %v2765_v10, %v2006_v36 }
 0x1f1   : > { %v1766_v3 = vadd.f32 %v1736_v21, %v1666_v35  ;;  %v1641_v32 = vpop.f32.mrf.mxu2  ;;  %v2013_v21 = vunpack.c.l.b16 %v2007_v58 }
 0x1f2   : > { %v2010_v17 = vsel %vm3361_vm9, %v2008_v56, %v2009_v12 }
 0x1f3   : > { %v1525_v23 = vpop.f32.mrf.mxu0  ;;  %v1782_v53 = vadd.f32 %v3719_v47, %v1766_v3  ;;  %v2014_v3 = vunpack.c.l.b16 %v2010_v17 }
 0x1f4   : > { %v1578_v40 = vadd.f32 %v1577_v11, %v1525_v23 }
 0x1f5   : > { %v1798_v39 = vpack.c.bf16 %v1782_v53, %v1782_v53  ;;  %2771 = vmatmul.msk.bf16.gmra.mxu3 %vm631_vm4, %v3489_v51  ;;  %v1582_v48 = vpop.f32.mrf.mxu1  ;;  %v2015_v53 = vpack.c.b16 %v2014_v3, %v2013_v21 }
 0x1f6   : > { %2744 = vmatmul.msk.bf16.gmra.mxu0 %vm631_vm4, %v3467_v15  ;;  %v1667_v29 = vadd.f32 %v1639_v26, %v1578_v40  ;;  %2762 = vmatmul.msk.bf16.gmra.mxu2 %vm631_vm4, %v3317_v45 }
 0x1f7   : > { %2729 = vst.msk [vmem:[%s3397_s15 + $0x9c] sm:$0xf] %vm329_vm1, %v1798_v39 }
 0x1f8   : > { %v1739_v16 = vpop.f32.mrf.mxu3  ;;  %2753 = vmatmul.msk.bf16.gmra.mxu1 %vm631_vm4, %v3293_v2 }
 0x1f9   : > { %v1767_v41 = vadd.f32 %v1739_v16, %v1667_v29  ;;  %v1644_v20 = vpop.f32.mrf.mxu2 }
 0x1fb   : > { %v1527_v42 = vpop.f32.mrf.mxu0  ;;  %v1783_v54 = vadd.f32 %v3719_v47, %v1767_v41 }
 0x1fc   : > { %v1580_v15 = vadd.f32 %v1579_v19, %v1527_v42 }
 0x1fd   : > { %v1799_v30 = vpack.c.bf16 %v1783_v54, %v1783_v54  ;;  %v1584_v34 = vpop.f32.mrf.mxu1 }
 0x1fe   : > { %v1668_v44 = vadd.f32 %v1641_v32, %v1580_v15 }
 0x1ff   : > { %2730 = vst.msk [vmem:[%s3397_s15 + $0xa0] sm:$0xf] %vm329_vm1, %v1799_v30 }
 0x200   : > { %v1741_v46 = vpop.f32.mrf.mxu3 }
 0x201   : > { %v1768_v49 = vadd.f32 %v1741_v46, %v1668_v44  ;;  %v1646_v50 = vpop.f32.mrf.mxu2 }
 0x203   : > { %v1530_v18 = vpop.f32.mrf.mxu0  ;;  %v1784_v52 = vadd.f32 %v3719_v47, %v1768_v49 }
 0x204   : > { %v1583_v61 = vadd.f32 %v1582_v48, %v1530_v18 }
 0x205   : > { %v1800_v8 = vpack.c.bf16 %v1784_v52, %v1784_v52  ;;  %2772 = vmatmul.msk.bf16.gmra.mxu3 %vm631_vm4, %v3511_v37  ;;  %v1587_v55 = vpop.f32.mrf.mxu1 }
 0x206   : > { %2745 = vmatmul.msk.bf16.gmra.mxu0 %vm631_vm4, %v3489_v51  ;;  %v1669_v2 = vadd.f32 %v1644_v20, %v1583_v61  ;;  %2763 = vmatmul.msk.bf16.gmra.mxu2 %vm631_vm4, %v3349_v14 }
 0x207   : > { %2731 = vst.msk [vmem:[%s3397_s15 + $0xa4] sm:$0xf] %vm329_vm1, %v1800_v8 }
 0x208   : > { %v1744_v1 = vpop.f32.mrf.mxu3  ;;  %2754 = vmatmul.msk.bf16.gmra.mxu1 %vm631_vm4, %v3317_v45 }
 0x209   : > { %v1769_v22 = vadd.f32 %v1744_v1, %v1669_v2  ;;  %v1649_v57 = vpop.f32.mrf.mxu2 }
 0x20b   : > { %v1532_v24 = vpop.f32.mrf.mxu0  ;;  %v1785_v28 = vadd.f32 %v3719_v47, %v1769_v22 }
 0x20c   : > { %v1585_v51 = vadd.f32 %v1584_v34, %v1532_v24 }
 0x20d   : > { %v1801_v33 = vpack.c.bf16 %v1785_v28, %v1785_v28  ;;  %v1589_v38 = vpop.f32.mrf.mxu1 }
 0x20e   : > { %v1670_v62 = vadd.f32 %v1646_v50, %v1585_v51 }
 0x20f   : > { %2732 = vst.msk [vmem:[%s3397_s15 + $0xa8] sm:$0xf] %vm329_vm1, %v1801_v33 }
 0x210   : > { %v1746_v63 = vpop.f32.mrf.mxu3 }
 0x211   : > { %v1770_v4 = vadd.f32 %v1746_v63, %v1670_v62  ;;  %v1651_v25 = vpop.f32.mrf.mxu2 }
 0x213   : > { %v1535_v6 = vpop.f32.mrf.mxu0  ;;  %v1786_v7 = vadd.f32 %v3719_v47, %v1770_v4 }
 0x214   : > { %v1588_v45 = vadd.f32 %v1587_v55, %v1535_v6 }
 0x215   : > { %v1802_v9 = vpack.c.bf16 %v1786_v7, %v1786_v7  ;;  %2773 = vmatmul.msk.bf16.gmra.mxu3 %vm631_vm4, %v3549_v31  ;;  %v1592_v11 = vpop.f32.mrf.mxu1 }
 0x216   : > { %2746 = vmatmul.msk.bf16.gmra.mxu0 %vm631_vm4, %v3511_v37  ;;  %v1671_v60 = vadd.f32 %v1649_v57, %v1588_v45  ;;  %2764 = vmatmul.msk.bf16.gmra.mxu2 %vm631_vm4, %v3675_v5 }
 0x217   : > { %2733 = vst.msk [vmem:[%s3397_s15 + $0xac] sm:$0xf] %vm329_vm1, %v1802_v9 }
 0x218   : > { %v1749_v59 = vpop.f32.mrf.mxu3  ;;  %2755 = vmatmul.msk.bf16.gmra.mxu1 %vm631_vm4, %v3349_v14 }
 0x219   : > { %v1771_v26 = vadd.f32 %v1749_v59, %v1671_v60  ;;  %v1654_v0 = vpop.f32.mrf.mxu2 }
 0x21b   : > { %v1537_v37 = vpop.f32.mrf.mxu0  ;;  %v1787_v13 = vadd.f32 %v3719_v47, %v1771_v26 }
 0x21c   : > { %v1590_v19 = vadd.f32 %v1589_v38, %v1537_v37 }
 0x21d   : > { %v1803_v35 = vpack.c.bf16 %v1787_v13, %v1787_v13  ;;  %v1594_v5 = vpop.f32.mrf.mxu1 }
 0x21e   : > { %v1672_v23 = vadd.f32 %v1651_v25, %v1590_v19 }
 0x21f   : > { %2734 = vst.msk [vmem:[%s3397_s15 + $0xb0] sm:$0xf] %vm329_vm1, %v1803_v35 }
 0x220   : > { %v1751_v14 = vpop.f32.mrf.mxu3 }
 0x221   : > { %v1772_v32 = vadd.f32 %v1751_v14, %v1672_v23  ;;  %v1656_v39 = vpop.f32.mrf.mxu2 }
 0x223   : > { %v1540_v40 = vpop.f32.mrf.mxu0  ;;  %v1788_v29 = vadd.f32 %v3719_v47, %v1772_v32 }
 0x224   : > { %v1593_v27 = vadd.f32 %v1592_v11, %v1540_v40 }
 0x225   : > { %v1804_v48 = vpack.c.bf16 %v1788_v29, %v1788_v29  ;;  %2774 = vmatmul.msk.bf16.gmra.mxu3 %vm631_vm4, %v2015_v53  ;;  %v1892_v41 = vpop.f32.mrf.mxu1 }
 0x226   : > { %2747 = vmatmul.msk.bf16.gmra.mxu0 %vm631_vm4, %v3549_v31  ;;  %v1673_v16 = vadd.f32 %v1654_v0, %v1593_v27 }
 0x227   : > { %2735 = vst.msk [vmem:[%s3397_s15 + $0xb4] sm:$0xf] %vm329_vm1, %v1804_v48 }
 0x228   : > { %v1754_v42 = vpop.f32.mrf.mxu3 }
 0x229   : > { %v1773_v20 = vadd.f32 %v1754_v42, %v1673_v16  ;;  %v1946_v15 = vpop.f32.mrf.mxu2 }
 0x22b   : > { %v1542_v54 = vpop.f32.mrf.mxu0  ;;  %v1789_v30 = vadd.f32 %v3719_v47, %v1773_v20 }
 0x22c   : > { %v1595_v34 = vadd.f32 %v1594_v5, %v1542_v54 }
 0x22d   : > { %v1805_v44 = vpack.c.bf16 %v1789_v30, %v1789_v30  ;;  %v1894_v46 = vpop.f32.mrf.mxu1 }
 0x22e   : > { %v1674_v49 = vadd.f32 %v1656_v39, %v1595_v34 }
 0x22f   : > { %2736 = vst.msk [vmem:[%s3397_s15 + $0xb8] sm:$0xf] %vm329_vm1, %v1805_v44 }
 0x230   : > { %v1756_v31 = vpop.f32.mrf.mxu3 }
 0x231   : > { %v1774_v18 = vadd.f32 %v1756_v31, %v1674_v49  ;;  %v1948_v52 = vpop.f32.mrf.mxu2 }
 0x233   : > { %v1840_v50 = vpop.f32.mrf.mxu0  ;;  %v1790_v61 = vadd.f32 %v3719_v47, %v1774_v18 }
 0x234   : > { %v1893_v8 = vadd.f32 %v1892_v41, %v1840_v50 }
 0x235   : > { %v1806_v2 = vpack.c.bf16 %v1790_v61, %v1790_v61  ;;  %v1897_v1 = vpop.f32.mrf.mxu1 }
 0x236   : > { %v1986_v55 = vadd.f32 %v1946_v15, %v1893_v8 }
 0x237   : > { %2737 = vst.msk [vmem:[%s3397_s15 + $0xbc] sm:$0xf] %vm329_vm1, %v1806_v2 }
 0x238   : > { %v2031_v22 = vpop.f32.mrf.mxu3 }
 0x239   : > { %v2071_v24 = vadd.f32 %v2031_v22, %v1986_v55  ;;  %v1951_v28 = vpop.f32.mrf.mxu2 }
 0x23b   : > { %v1842_v57 = vpop.f32.mrf.mxu0  ;;  %v2087_v51 = vadd.f32 %v3719_v47, %v2071_v24 }
 0x23c   : > { %v1895_v33 = vadd.f32 %v1894_v46, %v1842_v57 }
 0x23d   : > { %v2103_v38 = vpack.c.bf16 %v2087_v51, %v2087_v51  ;;  %v1899_v62 = vpop.f32.mrf.mxu1 }
 0x23e   : > { %v1987_v63 = vadd.f32 %v1948_v52, %v1895_v33 }
 0x23f   : > { %2775 = vst.msk [vmem:[%s3397_s15 + $0xc0] sm:$0xf] %vm329_vm1, %v2103_v38 }
 0x240   : > { %v2033_v4 = vpop.f32.mrf.mxu3 }
 0x241   : > { %v2072_v6 = vadd.f32 %v2033_v4, %v1987_v63  ;;  %v1953_v36 = vpop.f32.mrf.mxu2 }
 0x243   : > { %v1845_v25 = vpop.f32.mrf.mxu0  ;;  %v2088_v7 = vadd.f32 %v3719_v47, %v2072_v6 }
 0x244   : > { %v1898_v45 = vadd.f32 %v1897_v1, %v1845_v25 }
 0x245   : > { %v2104_v43 = vpack.c.bf16 %v2088_v7, %v2088_v7  ;;  %v1902_v60 = vpop.f32.mrf.mxu1 }
 0x246   : > { %v1988_v9 = vadd.f32 %v1951_v28, %v1898_v45 }
 0x247   : > { %2776 = vst.msk [vmem:[%s3397_s15 + $0xc4] sm:$0xf] %vm329_vm1, %v2104_v43 }
 0x248   : > { %v2036_v11 = vpop.f32.mrf.mxu3 }
 0x249   : > { %v2073_v10 = vadd.f32 %v2036_v11, %v1988_v9  ;;  %v1956_v12 = vpop.f32.mrf.mxu2 }
 0x24b   : > { %v1847_v56 = vpop.f32.mrf.mxu0  ;;  %v2089_v59 = vadd.f32 %v3719_v47, %v2073_v10 }
 0x24c   : > { %v1900_v26 = vadd.f32 %v1899_v62, %v1847_v56 }
 0x24d   : > { %v2105_v37 = vpack.c.bf16 %v2089_v59, %v2089_v59  ;;  %v1904_v0 = vpop.f32.mrf.mxu1 }
 0x24e   : > { %v1989_v58 = vadd.f32 %v1953_v36, %v1900_v26 }
 0x24f   : > { %2777 = vst.msk [vmem:[%s3397_s15 + $0xc8] sm:$0xf] %vm329_vm1, %v2105_v37 }
 0x250   : > { %v2038_v17 = vpop.f32.mrf.mxu3 }
 0x251   : > { %v2074_v13 = vadd.f32 %v2038_v17, %v1989_v58  ;;  %v1958_v35 = vpop.f32.mrf.mxu2 }
 0x253   : > { %v1850_v19 = vpop.f32.mrf.mxu0  ;;  %v2090_v21 = vadd.f32 %v3719_v47, %v2074_v13 }
 0x254   : > { %v1903_v3 = vadd.f32 %v1902_v60, %v1850_v19 }
 0x255   : > { %v2106_v5 = vpack.c.bf16 %v2090_v21, %v2090_v21  ;;  %v1907_v14 = vpop.f32.mrf.mxu1 }
 0x256   : > { %v1990_v23 = vadd.f32 %v1956_v12, %v1903_v3 }
 0x257   : > { %2778 = vst.msk [vmem:[%s3397_s15 + $0xcc] sm:$0xf] %vm329_vm1, %v2106_v5 }
 0x258   : > { %v2041_v32 = vpop.f32.mrf.mxu3 }
 0x259   : > { %v2075_v53 = vadd.f32 %v2041_v32, %v1990_v23  ;;  %v1961_v39 = vpop.f32.mrf.mxu2 }
 0x25b   : > { %v1852_v40 = vpop.f32.mrf.mxu0  ;;  %v2091_v29 = vadd.f32 %v3719_v47, %v2075_v53 }
 0x25c   : > { %v1905_v27 = vadd.f32 %v1904_v0, %v1852_v40 }
 0x25d   : > { %v2107_v48 = vpack.c.bf16 %v2091_v29, %v2091_v29  ;;  %v1909_v16 = vpop.f32.mrf.mxu1 }
 0x25e   : > { %v1991_v41 = vadd.f32 %v1958_v35, %v1905_v27 }
 0x25f   : > { %2779 = vst.msk [vmem:[%s3397_s15 + $0xd0] sm:$0xf] %vm329_vm1, %v2107_v48 }
 0x260   : > { %v2043_v42 = vpop.f32.mrf.mxu3 }
 0x261   : > { %v2076_v20 = vadd.f32 %v2043_v42, %v1991_v41  ;;  %v1963_v15 = vpop.f32.mrf.mxu2 }
 0x263   : > { %v1855_v54 = vpop.f32.mrf.mxu0  ;;  %v2092_v30 = vadd.f32 %v3719_v47, %v2076_v20 }
 0x264   : > { %v1908_v34 = vadd.f32 %v1907_v14, %v1855_v54 }
 0x265   : > { %v2108_v44 = vpack.c.bf16 %v2092_v30, %v2092_v30  ;;  %v1912_v49 = vpop.f32.mrf.mxu1 }
 0x266   : > { %v1992_v46 = vadd.f32 %v1961_v39, %v1908_v34 }
 0x267   : > { %2780 = vst.msk [vmem:[%s3397_s15 + $0xd4] sm:$0xf] %vm329_vm1, %v2108_v44 }
 0x268   : > { %v2046_v31 = vpop.f32.mrf.mxu3 }
 0x269   : > { %v2077_v18 = vadd.f32 %v2046_v31, %v1992_v46  ;;  %v1966_v52 = vpop.f32.mrf.mxu2 }
 0x26b   : > { %v1857_v50 = vpop.f32.mrf.mxu0  ;;  %v2093_v61 = vadd.f32 %v3719_v47, %v2077_v18 }
 0x26c   : > { %v1910_v8 = vadd.f32 %v1909_v16, %v1857_v50 }
 0x26d   : > { %v2109_v2 = vpack.c.bf16 %v2093_v61, %v2093_v61  ;;  %v1914_v55 = vpop.f32.mrf.mxu1 }
 0x26e   : > { %v1993_v1 = vadd.f32 %v1963_v15, %v1910_v8 }
 0x26f   : > { %2781 = vst.msk [vmem:[%s3397_s15 + $0xd8] sm:$0xf] %vm329_vm1, %v2109_v2 }
 0x270   : > { %v2048_v22 = vpop.f32.mrf.mxu3 }
 0x271   : > { %v2078_v24 = vadd.f32 %v2048_v22, %v1993_v1  ;;  %v1968_v28 = vpop.f32.mrf.mxu2 }
 0x273   : > { %v1860_v57 = vpop.f32.mrf.mxu0  ;;  %v2094_v51 = vadd.f32 %v3719_v47, %v2078_v24 }
 0x274   : > { %v1913_v33 = vadd.f32 %v1912_v49, %v1860_v57 }
 0x275   : > { %v2110_v38 = vpack.c.bf16 %v2094_v51, %v2094_v51  ;;  %v1917_v4 = vpop.f32.mrf.mxu1 }
 0x276   : > { %v1994_v62 = vadd.f32 %v1966_v52, %v1913_v33 }
 0x277   : > { %2782 = vst.msk [vmem:[%s3397_s15 + $0xdc] sm:$0xf] %vm329_vm1, %v2110_v38 }
 0x278   : > { %v2051_v63 = vpop.f32.mrf.mxu3 }
 0x279   : > { %v2079_v6 = vadd.f32 %v2051_v63, %v1994_v62  ;;  %v1971_v45 = vpop.f32.mrf.mxu2 }
 0x27b   : > { %v1862_v25 = vpop.f32.mrf.mxu0  ;;  %v2095_v36 = vadd.f32 %v3719_v47, %v2079_v6  ;;  %v2169_v6 = vld [vmem:[%s3397_s15 + $0x8] sm:$0xff] (%p3010_p5)  }
 0x27c   : > { %v1915_v7 = vadd.f32 %v1914_v55, %v1862_v25  ;;  %v2173_v25 = vld [vmem:[%s3397_s15 + $0x10] sm:$0xff] (%p3010_p5)   ;;  %2170 = vst [vmem:[%s3869_s28 + $0x8] sm:$0xff] (%p3010_p5), %v2169_v6  }
 0x27d   : > { %v2111_v43 = vpack.c.bf16 %v2095_v36, %v2095_v36  ;;  %v1919_v56 = vpop.f32.mrf.mxu1  ;;  %v2177_v36 = vld [vmem:[%s3397_s15 + $0x18] sm:$0xff] (%p3010_p5)   ;;  %2174 = vst [vmem:[%s3869_s28 + $0x10] sm:$0xff] (%p3010_p5), %v2173_v25  }
 0x27e   : > { %v1995_v9 = vadd.f32 %v1968_v28, %v1915_v7  ;;  %v2181_v7 = vld [vmem:[%s3397_s15 + $0x20] sm:$0xff] (%p3010_p5)   ;;  %2178 = vst [vmem:[%s3869_s28 + $0x18] sm:$0xff] (%p3010_p5), %v2177_v36  }
 0x27f   : > { %2783 = vst.msk [vmem:[%s3397_s15 + $0xe0] sm:$0xf] %vm329_vm1, %v2111_v43  ;;  %v2189_v43 = vld [vmem:[%s3397_s15 + $0x30] sm:$0xff] (%p3010_p5)  }
 0x280   : > { %v2053_v60 = vpop.f32.mrf.mxu3  ;;  %2182 = vst [vmem:[%s3869_s28 + $0x20] sm:$0xff] (%p3010_p5), %v2181_v7  }
 0x281   : > { %v2080_v11 = vadd.f32 %v2053_v60, %v1995_v9  ;;  %v1973_v0 = vpop.f32.mrf.mxu2  ;;  %v2193_v9 = vld [vmem:[%s3397_s15 + $0x38] sm:$0xff] (%p3010_p5)   ;;  %v2197_v60 = vld [vmem:[%s3397_s15 + $0x40] sm:$0xff] (%p3010_p5)   ;;  %2190 = vst [vmem:[%s3869_s28 + $0x30] sm:$0xff] (%p3010_p5), %v2189_v43  }
 0x282   : > { %2194 = vst [vmem:[%s3869_s28 + $0x38] sm:$0xff] (%p3010_p5), %v2193_v9  }
 0x283   : > { %v1865_v10 = vpop.f32.mrf.mxu0  ;;  %v2096_v12 = vadd.f32 %v3719_v47, %v2080_v11  ;;  %v2201_v11 = vld [vmem:[%s3397_s15 + $0x48] sm:$0xff] (%p3010_p5)   ;;  %2198 = vst [vmem:[%s3869_s28 + $0x100] sm:$0xff] (%p3010_p5), %v2197_v60  }
 0x284   : > { %v1918_v59 = vadd.f32 %v1917_v4, %v1865_v10  ;;  %v2205_v10 = vld [vmem:[%s3397_s15 + $0x50] sm:$0xff] (%p3010_p5)   ;;  %2202 = vst [vmem:[%s3869_s28 + $0x108] sm:$0xff] (%p3010_p5), %v2201_v11  }
 0x285   : > { %v2112_v26 = vpack.c.bf16 %v2096_v12, %v2096_v12  ;;  %v1922_v21 = vpop.f32.mrf.mxu1  ;;  %v2213_v12 = vld [vmem:[%s3397_s15 + $0x60] sm:$0xff] (%p3010_p5)   ;;  %2206 = vst [vmem:[%s3869_s28 + $0x110] sm:$0xff] (%p3010_p5), %v2205_v10  }
 0x286   : > { %v1996_v37 = vadd.f32 %v1971_v45, %v1918_v59  ;;  %v2185_v45 = vld [vmem:[%s3397_s15 + $0x28] sm:$0xff] (%p3010_p5)   ;;  %2214 = vst [vmem:[%s3869_s28 + $0x120] sm:$0xff] (%p3010_p5), %v2213_v12  }
 0x287   : > { %2784 = vst.msk [vmem:[%s3397_s15 + $0xe4] sm:$0xf] %vm329_vm1, %v2112_v26  ;;  %v2217_v59 = vld [vmem:[%s3397_s15 + $0x68] sm:$0xff] (%p3010_p5)   ;;  %v2221_v26 = vld [vmem:[%s3397_s15 + $0x70] sm:$0xff] (%p3010_p5)  }
 0x288   : > { %v2056_v58 = vpop.f32.mrf.mxu3  ;;  %2186 = vst [vmem:[%s3869_s28 + $0x28] sm:$0xff] (%p3010_p5), %v2185_v45  }
 0x289   : > { %v2081_v17 = vadd.f32 %v2056_v58, %v1996_v37  ;;  %v1976_v23 = vpop.f32.mrf.mxu2  ;;  %v2225_v37 = vld [vmem:[%s3397_s15 + $0x78] sm:$0xff] (%p3010_p5)   ;;  %2218 = vst [vmem:[%s3869_s28 + $0x128] sm:$0xff] (%p3010_p5), %v2217_v59   ;;  %v2233_v58 = vld [vmem:[%s3397_s15 + $0x88] sm:$0xff] (%p3010_p5)  }
 0x28a   : > { %2222 = vst [vmem:[%s3869_s28 + $0x130] sm:$0xff] (%p3010_p5), %v2221_v26  }
 0x28b   : > { %v1867_v13 = vpop.f32.mrf.mxu0  ;;  %v2097_v19 = vadd.f32 %v3719_v47, %v2081_v17  ;;  %2226 = vst [vmem:[%s3869_s28 + $0x138] sm:$0xff] (%p3010_p5), %v2225_v37   ;;  %v2237_v17 = vld [vmem:[%s3397_s15 + $0x90] sm:$0xff] (%p3010_p5)  }
 0x28c   : > { %v1920_v35 = vadd.f32 %v1919_v56, %v1867_v13  ;;  %v2209_v56 = vld [vmem:[%s3397_s15 + $0x58] sm:$0xff] (%p3010_p5)   ;;  %2234 = vst [vmem:[%s3869_s28 + $0x208] sm:$0xff] (%p3010_p5), %v2233_v58  }
 0x28d   : > { %v2113_v3 = vpack.c.bf16 %v2097_v19, %v2097_v19  ;;  %v1924_v48 = vpop.f32.mrf.mxu1  ;;  %2210 = vst [vmem:[%s3869_s28 + $0x118] sm:$0xff] (%p3010_p5), %v2209_v56   ;;  %v2241_v13 = vld [vmem:[%s3397_s15 + $0x98] sm:$0xff] (%p3010_p5)   ;;  %v2245_v19 = vld [vmem:[%s3397_s15 + $0xa0] sm:$0xff] (%p3010_p5)  }
 0x28e   : > { %v1997_v5 = vadd.f32 %v1973_v0, %v1920_v35  ;;  %v2229_v0 = vld [vmem:[%s3397_s15 + $0x80] sm:$0xff] (%p3010_p5)   ;;  %2238 = vst [vmem:[%s3869_s28 + $0x210] sm:$0xff] (%p3010_p5), %v2237_v17   ;;  %v2249_v35 = vld [vmem:[%s3397_s15 + $0xa8] sm:$0xff] (%p3010_p5)  }
 0x28f   : > { %2785 = vst.msk [vmem:[%s3397_s15 + $0xe8] sm:$0xf] %vm329_vm1, %v2113_v3  ;;  %v2257_v3 = vld [vmem:[%s3397_s15 + $0xb8] sm:$0xff] (%p3010_p5)  }
 0x290   : > { %v2058_v14 = vpop.f32.mrf.mxu3  ;;  %2230 = vst [vmem:[%s3869_s28 + $0x200] sm:$0xff] (%p3010_p5), %v2229_v0  }
 0x291   : > { %v2082_v32 = vadd.f32 %v2058_v14, %v1997_v5  ;;  %v1978_v42 = vpop.f32.mrf.mxu2  ;;  %2242 = vst [vmem:[%s3869_s28 + $0x218] sm:$0xff] (%p3010_p5), %v2241_v13   ;;  %v2261_v5 = vld [vmem:[%s3397_s15 + $0xc0] sm:$0xff] (%p3010_p5)   ;;  %v2269_v14 = vld [vmem:[%s3397_s15 + $0xd0] sm:$0xff] (%p3010_p5)  }
 0x292   : > { %2246 = vst [vmem:[%s3869_s28 + $0x220] sm:$0xff] (%p3010_p5), %v2245_v19  }
 0x293   : > { %v1870_v53 = vpop.f32.mrf.mxu0  ;;  %v2098_v40 = vadd.f32 %v3719_v47, %v2082_v32  ;;  %2250 = vst [vmem:[%s3869_s28 + $0x228] sm:$0xff] (%p3010_p5), %v2249_v35   ;;  %v2273_v32 = vld [vmem:[%s3397_s15 + $0xd8] sm:$0xff] (%p3010_p5)  }
 0x294   : > { %v1923_v39 = vadd.f32 %v1922_v21, %v1870_v53  ;;  %v2253_v21 = vld [vmem:[%s3397_s15 + $0xb0] sm:$0xff] (%p3010_p5)   ;;  %2258 = vst [vmem:[%s3869_s28 + $0x238] sm:$0xff] (%p3010_p5), %v2257_v3   ;;  %v2277_v53 = vld [vmem:[%s3397_s15 + $0xe0] sm:$0xff] (%p3010_p5)  }
 0x295   : > { %v2114_v29 = vpack.c.bf16 %v2098_v40, %v2098_v40  ;;  %v1927_v44 = vpop.f32.mrf.mxu1  ;;  %2254 = vst [vmem:[%s3869_s28 + $0x230] sm:$0xff] (%p3010_p5), %v2253_v21  }
 0x296   : > { %v1998_v27 = vadd.f32 %v1976_v23, %v1923_v39  ;;  %v2265_v23 = vld [vmem:[%s3397_s15 + $0xc8] sm:$0xff] (%p3010_p5)   ;;  %2262 = vst [vmem:[%s3869_s28 + $0x300] sm:$0xff] (%p3010_p5), %v2261_v5  }
 0x297   : > { %2786 = vst.msk [vmem:[%s3397_s15 + $0xec] sm:$0xf] %vm329_vm1, %v2114_v29 }
 0x298   : > { %v2061_v16 = vpop.f32.mrf.mxu3  ;;  %2266 = vst [vmem:[%s3869_s28 + $0x308] sm:$0xff] (%p3010_p5), %v2265_v23  }
 0x299   : > { %v2083_v41 = vadd.f32 %v2061_v16, %v1998_v27  ;;  %v1981_v52 = vpop.f32.mrf.mxu2  ;;  %2270 = vst [vmem:[%s3869_s28 + $0x310] sm:$0xff] (%p3010_p5), %v2269_v14  }
 0x29a   : > { %2274 = vst [vmem:[%s3869_s28 + $0x318] sm:$0xff] (%p3010_p5), %v2273_v32  }
 0x29b   : > { %v1872_v20 = vpop.f32.mrf.mxu0  ;;  %v2099_v54 = vadd.f32 %v3719_v47, %v2083_v41  ;;  %2278 = vst [vmem:[%s3869_s28 + $0x320] sm:$0xff] (%p3010_p5), %v2277_v53  }
 0x29c   : > { %v1925_v15 = vadd.f32 %v1924_v48, %v1872_v20 }
 0x29d   : > { %v2115_v30 = vpack.c.bf16 %v2099_v54, %v2099_v54  ;;  %v1929_v1 = vpop.f32.mrf.mxu1 }
 0x29e   : > { %v1999_v34 = vadd.f32 %v1978_v42, %v1925_v15  ;;  %v2281_v40 = vld [vmem:[%s3397_s15 + $0xe8] sm:$0xff] (%p3010_p5)  }
 0x29f   : > { %2787 = vst.msk [vmem:[%s3397_s15 + $0xf0] sm:$0xf] %vm329_vm1, %v2115_v30 }
 0x2a0   : > { %v2063_v46 = vpop.f32.mrf.mxu3  ;;  %2282 = vst [vmem:[%s3869_s28 + $0x328] sm:$0xff] (%p3010_p5), %v2281_v40  }
 0x2a1   : > { %v2084_v49 = vadd.f32 %v2063_v46, %v1999_v34  ;;  %v1983_v51 = vpop.f32.mrf.mxu2 }
 0x2a3   : > { %v1875_v31 = vpop.f32.mrf.mxu0  ;;  %v2100_v18 = vadd.f32 %v3719_v47, %v2084_v49 }
 0x2a4   : > { %v1928_v50 = vadd.f32 %v1927_v44, %v1875_v31 }
 0x2a5   : > { %v2116_v61 = vpack.c.bf16 %v2100_v18, %v2100_v18 }
 0x2a6   : > { %v2000_v8 = vadd.f32 %v1981_v52, %v1928_v50 }
 0x2a7   : > { %2788 = vst.msk [vmem:[%s3397_s15 + $0xf4] sm:$0xf] %vm329_vm1, %v2116_v61 }
 0x2a8   : > { %v2066_v2 = vpop.f32.mrf.mxu3 }
 0x2a9   : > { %v2085_v55 = vadd.f32 %v2066_v2, %v2000_v8 }
 0x2ab   : > { %v1877_v22 = vpop.f32.mrf.mxu0  ;;  %v2101_v24 = vadd.f32 %v3719_v47, %v2085_v55 }
 0x2ac   : > { %v1930_v57 = vadd.f32 %v1929_v1, %v1877_v22 }
 0x2ad   : > { %v2117_v28 = vpack.c.bf16 %v2101_v24, %v2101_v24 }
 0x2ae   : > { %v2001_v33 = vadd.f32 %v1983_v51, %v1930_v57  ;;  %v2285_v39 = vld [vmem:[%s3397_s15 + $0xf0] sm:$0xff] (%p3010_p5)  }
 0x2af   : > { %2789 = vst.msk [vmem:[%s3397_s15 + $0xf8] sm:$0xf] %vm329_vm1, %v2117_v28 }
 0x2b0   : > { %v2068_v38 = vpop.f32.mrf.mxu3  ;;  %2286 = vst [vmem:[%s3869_s28 + $0x330] sm:$0xff] (%p3010_p5), %v2285_v39  }
 0x2b1   : > { %v2086_v62 = vadd.f32 %v2068_v38, %v2001_v33 }
 0x2b3   : > { %v2102_v63 = vadd.f32 %v3719_v47, %v2086_v62  ;;  %2142 = sbr.rel (!%p3010_p5) target bundleno = 704 (0x2c0), region = 40  ;;  %v2165_v47 = vld [vmem:[%s3397_s15] sm:$0xff] (%p3010_p5)  }
 0x2b4   : > { %2166 = vst [vmem:[%s3869_s28] sm:$0xff] (%p3010_p5), %v2165_v47  }
 0x2b5   : > { %v2118_v4 = vpack.c.bf16 %v2102_v63, %v2102_v63 }
 0x2b7   : > { %2790 = vst.msk [vmem:[%s3397_s15 + $0xfc] sm:$0xf] %vm329_vm1, %v2118_v4 }
 0x2be   : > { %v2289_v29 = vld [vmem:[%s3397_s15 + $0xf8] sm:$0xff]  }
 0x2bf   : > { %2290 = vst [vmem:[%s3869_s28 + $0x338] sm:$0xff] %v2289_v29  }
 0x2c0 PF: > { %s14_s21 = sadd.s32 1, %s2937_s21   ;;  %s3964_s15 = smov %s2917_s16 }
 0x2c1   : > { %p11_p12 = scmp.ge.s32.totalorder %s14_s21, 6   ;;  %s3965_s16 = smov %s3021_s30 }
 0x2c2   : > { %s3966_s17 = smov %s2929_s19  ;;  %s3967_s18 = smov %s2933_s20 }
 0x2c3   : > { %s3968_s19 = smov %s3971_s22  ;;  %s3969_s20 = smov %s3975_s23 }
 0x2c4   :  { %13 = sbr.rel (!%p11_p12) target bundleno = 4 (0x4), region = 129 }

</bundles_post_ra>
